<compile_context>
chip_gen: v7x
topology: tpu7x:2x2x1
jax: 0.10.0
libtpu: 0.0.40
codegen_flags: <defaults>
</compile_context>

<pallas_src>
import numpy as np
import jax
import jax.numpy as jnp
from jax.experimental import pallas as pl
from jax.experimental.pallas import tpu as pltpu


def _bin_matrix(in_size, out_size):
    """(in_size, out_size) matrix: column i averages x[start_i:end_i] (PyTorch bins)."""
    P = np.zeros((in_size, out_size), dtype=np.float32)
    for i in range(out_size):
        start = (i * in_size) // out_size
        end = -((-(i + 1) * in_size) // out_size)  # ceil((i+1)*in/out)
        P[start:end, i] = 1.0 / (end - start)
    return P


def _resolve(size, D, H, W):
    if isinstance(size, int):
        size = (size, size, size)
    od = D if size[0] is None else size[0]
    oh = H if size[1] is None else size[1]
    ow = W if size[2] is None else size[2]
    return od, oh, ow


def make_fused_adaptive_avg_pool3d(in_shape, output_sizes, dtype=jnp.float32):
    """Build a single fused pallas_call computing adaptive_avg_pool3d(x, s) for every s."""
    N, C, D, H, W = in_shape
    NC, HW = N * C, H * W

    # Grid coarsening: 2 blocks so v7x's two TensorCores each take one step;
    # on single-TC v5e/v6e the second step only adds ~0.35 us of overhead.
    num_blocks = 2 if (NC % 2 == 0 and NC >= 2) else 1
    B = NC // num_blocks          # (n, c) volumes per grid step
    BD = B * D

    plans = []   # static per-output compute plan
    mats = []    # pooling-matrix operands (numpy), in kernel-argument order

    for size in output_sizes:
        od, oh, ow = _resolve(size, D, H, W)
        ohow = oh * ow
        if (od, oh, ow) == (1, 1, 1):
            plans.append(dict(kind="mean", od=od, oh=oh, ow=ow, ohow=1))
            continue
        hw_idx = d_idx = None
        if (oh, ow) != (H, W):
            hw_idx = len(mats)
            # Kronecker of the H and W averaging matrices: pools both spatial
            # axes in one (HW, oh*ow) matmul (row-major h*W+w flatten order).
            mats.append(np.kron(_bin_matrix(H, oh), _bin_matrix(W, ow)))
        if od != D:
            d_idx = len(mats)
            # Block-diagonal over the B batched volumes: one (B*od, B*D)
            # left-multiply pools D for all B volumes at once.
            mats.append(np.kron(np.eye(B, dtype=np.float32),
                                np.ascontiguousarray(_bin_matrix(D, od).T)))
        d_first = False
        if hw_idx is not None and d_idx is not None:
            cost_hw_first = BD * HW * ohow + (B * od) * BD * ohow
            cost_d_first = (B * od) * BD * HW + (B * od) * HW * ohow
            d_first = cost_d_first < cost_hw_first
        plans.append(dict(kind="pool", od=od, oh=oh, ow=ow, ohow=ohow,
                          hw=hw_idx, d=d_idx, d_first=d_first))

    # Global-mean outputs: reuse the smallest equal-bin pooled intermediate
    # (mean of equal, disjoint, covering bins == global mean) instead of
    # re-reducing the full (B*D, HW) slab.
    for plan in plans:
        if plan["kind"] != "mean":
            continue
        src = None
        src_sz = None
        for qi, q in enumerate(plans):
            if q["kind"] != "pool":
                continue
            if D % q["od"] or H % q["oh"] or W % q["ow"]:
                continue
            sz = q["od"] * q["ohow"]
            if src is None or sz < src_sz:
                src, src_sz = qi, sz
        plan["src"] = src
        plan["scale"] = (1.0 / src_sz) if src is not None else 1.0 / (D * HW)

    n_mats = len(mats)

    def kernel(*refs):
        x_ref = refs[0]
        mat_refs = refs[1:1 + n_mats]
        out_refs = refs[1 + n_mats:]
        # One (B*D, H*W) slab holding B full (n, c) volumes, loaded once and
        # reused by every output.
        x = x_ref[...].astype(jnp.float32)

        ys = {}
        # Pooled outputs: pure MXU matmuls (separable adaptive pooling).
        for pi, plan in enumerate(plans):
            if plan["kind"] != "pool":
                continue
            y = x
            if plan["d"] is not None and plan["d_first"]:
                y = jnp.dot(mat_refs[plan["d"]][...], y,
                            preferred_element_type=jnp.float32)
            if plan["hw"] is not None:
                y = jnp.dot(y, mat_refs[plan["hw"]][...],
                            preferred_element_type=jnp.float32)
            if plan["d"] is not None and not plan["d_first"]:
                y = jnp.dot(mat_refs[plan["d"]][...], y,
                            preferred_element_type=jnp.float32)
            ys[pi] = y
            out_refs[pi][...] = y.astype(out_refs[pi].dtype)

        # Global-mean outputs (VPU/XLU reduction of a tiny intermediate).
        for pi, plan in enumerate(plans):
            if plan["kind"] != "mean":
                continue
            src = plan["src"]
            if src is not None:
                q = plans[src]
                yr = ys[src].reshape(B, q["od"], q["ohow"])
            else:
                yr = x.reshape(B, D, HW)
            s = jnp.sum(jnp.sum(yr, axis=2, keepdims=True), axis=1)  # (B, 1)
            out_refs[pi][...] = (s * plan["scale"]).astype(out_refs[pi].dtype)

    # Specs: leading num_blocks axis is squeezed per grid step; every block's
    # trailing dims equal the full array dims, so alignment is always legal.
    in_specs = [pl.BlockSpec((None, BD, HW), lambda i: (i, 0, 0))]
    in_specs += [pl.BlockSpec(m.shape, lambda i: (0, 0)) for m in mats]

    out_specs, out_shape, out_final = [], [], []
    for plan in plans:
        if plan["kind"] == "mean":
            kshape = (B, 1)
        else:
            kshape = (B * plan["od"], plan["ohow"])
        out_specs.append(pl.BlockSpec((None,) + kshape, lambda i: (i, 0, 0)))
        out_shape.append(jax.ShapeDtypeStruct((num_blocks,) + kshape, dtype))
        out_final.append((N, C, plan["od"], plan["oh"], plan["ow"]))

    # Advisory cost so XLA schedules around the custom call sensibly.
    macs = 0
    for plan in plans:
        if plan["kind"] != "pool":
            continue
        od, ohow = plan["od"], plan["ohow"]
        if plan["d"] is not None and plan["hw"] is not None:
            if plan["d_first"]:
                macs += (B * od) * BD * HW + (B * od) * HW * ohow
            else:
                macs += BD * HW * ohow + (B * od) * BD * ohow
        elif plan["hw"] is not None:
            macs += BD * HW * ohow
        elif plan["d"] is not None:
            macs += (B * od) * BD * HW
    flops = 2 * macs * num_blocks
    bytes_accessed = 4 * (NC * D * HW
                          + sum(int(m.size) for m in mats)
                          + sum(int(np.prod(s.shape)) for s in out_shape))

    call = pl.pallas_call(
        kernel,
        grid=(num_blocks,),
        in_specs=in_specs,
        out_specs=out_specs,
        out_shape=out_shape,
        compiler_params=pltpu.CompilerParams(
            dimension_semantics=("parallel",),  # v7x: split the 2 blocks across both TCs
        ),
        cost_estimate=pl.CostEstimate(flops=int(flops), transcendentals=0,
                                      bytes_accessed=int(bytes_accessed)),
    )
    mats_dev = [jnp.asarray(m) for m in mats]

    def forward(x):
        x3 = x.reshape(num_blocks, BD, HW)      # contiguous reshape: no HBM transpose
        outs = call(x3, *mats_dev)
        return tuple(o.reshape(shape) for o, shape in zip(outs, out_final))

    return forward


_OUTPUT_SIZES = ((8, 11, 16), 1, (None, 3, 4), (6, None, None))
_FWD_CACHE = {}


def model_forward(x):
    key = (tuple(x.shape), jnp.dtype(x.dtype).name)
    fwd = _FWD_CACHE.get(key)
    if fwd is None:
        fwd = make_fused_adaptive_avg_pool3d(tuple(x.shape), _OUTPUT_SIZES, x.dtype)
        _FWD_CACHE[key] = fwd
    return fwd(x)


def _ref_adaptive_avg_pool3d(x, output_size):
    if isinstance(output_size, int):
        output_size = (output_size,) * 3
    N, C, D, H, W = x.shape
    od, oh, ow = [s if s is not None else d for s, d in zip(output_size, (D, H, W))]
    out = np.zeros((N, C, od, oh, ow), dtype=x.dtype)

    def bounds(i, ins, outs):
        return (i * ins) // outs, -((-(i + 1) * ins) // outs)

    for i in range(od):
        d0, d1 = bounds(i, D, od)
        for j in range(oh):
            h0, h1 = bounds(j, H, oh)
            for k in range(ow):
                w0, w1 = bounds(k, W, ow)
                out[:, :, i, j, k] = x[:, :, d0:d1, h0:h1, w0:w1].mean(axis=(2, 3, 4))
    return out


if __name__ == "__main__":
    key = jax.random.PRNGKey(0)
    # (N, C, D, H, W) - small 5D input consistent with adaptive_avg_pool3d
    x = jax.random.normal(key, (2, 3, 24, 33, 16), dtype=jnp.float32)

    outs = jax.block_until_ready(jax.jit(model_forward)(x))

    # Correctness check against a direct (loop-based) reference.
    x_np = np.asarray(x)
    for o, size in zip(outs, _OUTPUT_SIZES):
        r = _ref_adaptive_avg_pool3d(x_np, size)
        assert o.shape == r.shape, (o.shape, r.shape)
        np.testing.assert_allclose(np.asarray(o), r, rtol=1e-5, atol=1e-5)

    print("KERNEL_OK")
</pallas_src>

<mosaic_0001>
module attributes {stable_mosaic.version = 11 : i64} {
  func.func @kernel(%arg0: i32, %arg1: memref<1x72x528xf32, #tpu.memory_space<vmem>>, %arg2: memref<528x176xf32, #tpu.memory_space<vmem>>, %arg3: memref<24x72xf32, #tpu.memory_space<vmem>>, %arg4: memref<528x12xf32, #tpu.memory_space<vmem>>, %arg5: memref<18x72xf32, #tpu.memory_space<vmem>>, %arg6: memref<1x24x176xf32, #tpu.memory_space<vmem>>, %arg7: memref<1x3x1xf32, #tpu.memory_space<vmem>>, %arg8: memref<1x72x12xf32, #tpu.memory_space<vmem>>, %arg9: memref<1x18x528xf32, #tpu.memory_space<vmem>>) attributes {dimension_semantics = [#tpu.dimension_semantics<parallel>], iteration_bounds = array<i64: 2>, scalar_prefetch = 0 : i64, scratch_operands = 0 : i64, tpu.core_type = #tpu.core_type<tc>, window_params = [{transform_indices = @transform_0, window_bounds = array<i64: 1, 72, 528>}, {pipeline_mode = #tpu.pipeline_mode<synchronous>, transform_indices = @transform_1, window_bounds = array<i64: 528, 176>}, {pipeline_mode = #tpu.pipeline_mode<synchronous>, transform_indices = @transform_2, window_bounds = array<i64: 24, 72>}, {pipeline_mode = #tpu.pipeline_mode<synchronous>, transform_indices = @transform_3, window_bounds = array<i64: 528, 12>}, {pipeline_mode = #tpu.pipeline_mode<synchronous>, transform_indices = @transform_4, window_bounds = array<i64: 18, 72>}, {transform_indices = @transform_5, window_bounds = array<i64: 1, 24, 176>}, {transform_indices = @transform_6, window_bounds = array<i64: 1, 3, 1>}, {transform_indices = @transform_7, window_bounds = array<i64: 1, 72, 12>}, {transform_indices = @transform_8, window_bounds = array<i64: 1, 18, 528>}]} {
    %c0 = arith.constant 0 : index
    %c0_0 = arith.constant 0 : index
    %c0_1 = arith.constant 0 : index
    %0 = vector.load %arg1[%c0, %c0_0, %c0_1] : memref<1x72x528xf32, #tpu.memory_space<vmem>>, vector<1x72x528xf32>
    %1 = vector.shape_cast %0 : vector<1x72x528xf32> to vector<72x528xf32>
    %c0_2 = arith.constant 0 : index
    %c0_3 = arith.constant 0 : index
    %2 = vector.load %arg3[%c0_2, %c0_3] : memref<24x72xf32, #tpu.memory_space<vmem>>, vector<24x72xf32>
    %cst = arith.constant dense<0.000000e+00> : vector<24x528xf32>
    %3 = tpu.matmul %2, %1, %cst {dimension_numbers = #tpu.dot_dimension_numbers<[1], [0], [0], [1], [0, 0, 1, 1], [], []>} : vector<24x72xf32>, vector<72x528xf32>, vector<24x528xf32> -> vector<24x528xf32>
    %c0_4 = arith.constant 0 : index
    %c0_5 = arith.constant 0 : index
    %4 = vector.load %arg2[%c0_4, %c0_5] : memref<528x176xf32, #tpu.memory_space<vmem>>, vector<528x176xf32>
    %cst_6 = arith.constant dense<0.000000e+00> : vector<24x176xf32>
    %5 = tpu.matmul %3, %4, %cst_6 {dimension_numbers = #tpu.dot_dimension_numbers<[1], [0], [0], [1], [0, 0, 1, 1], [], []>} : vector<24x528xf32>, vector<528x176xf32>, vector<24x176xf32> -> vector<24x176xf32>
    %c0_7 = arith.constant 0 : index
    %c0_8 = arith.constant 0 : index
    %c0_9 = arith.constant 0 : index
    %6 = vector.load %arg6[%c0_7, %c0_8, %c0_9] : memref<1x24x176xf32, #tpu.memory_space<vmem>>, vector<1x24x176xf32>
    %7 = vector.shape_cast %6 : vector<1x24x176xf32> to vector<24x176xf32>
    %8 = vector.shape_cast %5 : vector<24x176xf32> to vector<1x24x176xf32>
    tpu.vector_store %arg6[%c0_7, %c0_8, %c0_9], %8 {strides = array<i32>} : memref<1x24x176xf32, #tpu.memory_space<vmem>>, vector<1x24x176xf32>,
    %c0_10 = arith.constant 0 : index
    %c0_11 = arith.constant 0 : index
    %9 = vector.load %arg4[%c0_10, %c0_11] : memref<528x12xf32, #tpu.memory_space<vmem>>, vector<528x12xf32>
    %cst_12 = arith.constant dense<0.000000e+00> : vector<72x12xf32>
    %10 = tpu.matmul %1, %9, %cst_12 {dimension_numbers = #tpu.dot_dimension_numbers<[1], [0], [0], [1], [0, 0, 1, 1], [], []>} : vector<72x528xf32>, vector<528x12xf32>, vector<72x12xf32> -> vector<72x12xf32>
    %c0_13 = arith.constant 0 : index
    %c0_14 = arith.constant 0 : index
    %c0_15 = arith.constant 0 : index
    %11 = vector.load %arg8[%c0_13, %c0_14, %c0_15] : memref<1x72x12xf32, #tpu.memory_space<vmem>>, vector<1x72x12xf32>
    %12 = vector.shape_cast %11 : vector<1x72x12xf32> to vector<72x12xf32>
    %13 = vector.shape_cast %10 : vector<72x12xf32> to vector<1x72x12xf32>
    tpu.vector_store %arg8[%c0_13, %c0_14, %c0_15], %13 {strides = array<i32>} : memref<1x72x12xf32, #tpu.memory_space<vmem>>, vector<1x72x12xf32>,
    %c0_16 = arith.constant 0 : index
    %c0_17 = arith.constant 0 : index
    %14 = vector.load %arg5[%c0_16, %c0_17] : memref<18x72xf32, #tpu.memory_space<vmem>>, vector<18x72xf32>
    %cst_18 = arith.constant dense<0.000000e+00> : vector<18x528xf32>
    %15 = tpu.matmul %14, %1, %cst_18 {dimension_numbers = #tpu.dot_dimension_numbers<[1], [0], [0], [1], [0, 0, 1, 1], [], []>} : vector<18x72xf32>, vector<72x528xf32>, vector<18x528xf32> -> vector<18x528xf32>
    %c0_19 = arith.constant 0 : index
    %c0_20 = arith.constant 0 : index
    %c0_21 = arith.constant 0 : index
    %16 = vector.load %arg9[%c0_19, %c0_20, %c0_21] : memref<1x18x528xf32, #tpu.memory_space<vmem>>, vector<1x18x528xf32>
    %17 = vector.shape_cast %16 : vector<1x18x528xf32> to vector<18x528xf32>
    %18 = vector.shape_cast %15 : vector<18x528xf32> to vector<1x18x528xf32>
    tpu.vector_store %arg9[%c0_19, %c0_20, %c0_21], %18 {strides = array<i32>} : memref<1x18x528xf32, #tpu.memory_space<vmem>>, vector<1x18x528xf32>,
    %19 = vector.shape_cast %10 : vector<72x12xf32> to vector<3x24x12xf32>
    %cst_22 = arith.constant dense<0.000000e+00> : vector<3x24xf32>
    %20 = vector.multi_reduction <add>, %19, %cst_22 [2] : vector<3x24x12xf32> to vector<3x24xf32>
    %21 = vector.shape_cast %20 : vector<3x24xf32> to vector<3x24x1xf32>
    %cst_23 = arith.constant dense<0.000000e+00> : vector<3x1xf32>
    %22 = vector.multi_reduction <add>, %21, %cst_23 [1] : vector<3x24x1xf32> to vector<3x1xf32>
    %cst_24 = arith.constant 0.00347222225 : f32
    %23 = vector.broadcast %cst_24 : f32 to vector<3x1xf32>
    %24 = arith.mulf %22, %23 : vector<3x1xf32>
    %c0_25 = arith.constant 0 : index
    %c0_26 = arith.constant 0 : index
    %c0_27 = arith.constant 0 : index
    %25 = vector.load %arg7[%c0_25, %c0_26, %c0_27] : memref<1x3x1xf32, #tpu.memory_space<vmem>>, vector<1x3x1xf32>
    %26 = vector.shape_cast %25 : vector<1x3x1xf32> to vector<3x1xf32>
    %27 = vector.shape_cast %24 : vector<3x1xf32> to vector<1x3x1xf32>
    tpu.vector_store %arg7[%c0_25, %c0_26, %c0_27], %27 {strides = array<i32>} : memref<1x3x1xf32, #tpu.memory_space<vmem>>, vector<1x3x1xf32>,
    return
  }
  func.func @transform_0(%arg0: i32) -> (i32, i32, i32) {
    %c0_i32 = arith.constant 0 : i32
    %c0_i32_0 = arith.constant 0 : i32
    %c0_i32_1 = arith.constant 0 : i32
    return %arg0, %c0_i32, %c0_i32_0 : i32, i32, i32
  }
  func.func @transform_1(%arg0: i32) -> (i32, i32) {
    %c0_i32 = arith.constant 0 : i32
    %c0_i32_0 = arith.constant 0 : i32
    %c0_i32_1 = arith.constant 0 : i32
    return %c0_i32, %c0_i32_0 : i32, i32
  }
  func.func @transform_2(%arg0: i32) -> (i32, i32) {
    %c0_i32 = arith.constant 0 : i32
    %c0_i32_0 = arith.constant 0 : i32
    %c0_i32_1 = arith.constant 0 : i32
    return %c0_i32, %c0_i32_0 : i32, i32
  }
  func.func @transform_3(%arg0: i32) -> (i32, i32) {
    %c0_i32 = arith.constant 0 : i32
    %c0_i32_0 = arith.constant 0 : i32
    %c0_i32_1 = arith.constant 0 : i32
    return %c0_i32, %c0_i32_0 : i32, i32
  }
  func.func @transform_4(%arg0: i32) -> (i32, i32) {
    %c0_i32 = arith.constant 0 : i32
    %c0_i32_0 = arith.constant 0 : i32
    %c0_i32_1 = arith.constant 0 : i32
    return %c0_i32, %c0_i32_0 : i32, i32
  }
  func.func @transform_5(%arg0: i32) -> (i32, i32, i32) {
    %c0_i32 = arith.constant 0 : i32
    %c0_i32_0 = arith.constant 0 : i32
    %c0_i32_1 = arith.constant 0 : i32
    return %arg0, %c0_i32, %c0_i32_0 : i32, i32, i32
  }
  func.func @transform_6(%arg0: i32) -> (i32, i32, i32) {
    %c0_i32 = arith.constant 0 : i32
    %c0_i32_0 = arith.constant 0 : i32
    %c0_i32_1 = arith.constant 0 : i32
    return %arg0, %c0_i32, %c0_i32_0 : i32, i32, i32
  }
  func.func @transform_7(%arg0: i32) -> (i32, i32, i32) {
    %c0_i32 = arith.constant 0 : i32
    %c0_i32_0 = arith.constant 0 : i32
    %c0_i32_1 = arith.constant 0 : i32
    return %arg0, %c0_i32, %c0_i32_0 : i32, i32, i32
  }
  func.func @transform_8(%arg0: i32) -> (i32, i32, i32) {
    %c0_i32 = arith.constant 0 : i32
    %c0_i32_0 = arith.constant 0 : i32
    %c0_i32_1 = arith.constant 0 : i32
    return %arg0, %c0_i32, %c0_i32_0 : i32, i32, i32
  }
}

</mosaic_0001>

<bundles_post_ra>
// kernel: model_forward.1
= control target key start
LH: loop header
LB: loop body
LE: loop exit
PB: predicated region body
PF: predicated region fallthrough
CT: control target
= control target key end

     0   :  { %s2624_s27 = smov 0   ;;  %s3801_s0 = inlined_call_operand.vmem [shape: f32[2,72,528], index: 0, kind: input, shape index: {}]   ;;  %s3802_s1 = inlined_call_operand.vmem [shape: f32[528,176], index: 1, kind: input, shape index: {}]   ;;  %s3803_s2 = inlined_call_operand.vmem [shape: f32[24,72], index: 2, kind: input, shape index: {}]   ;;  %s3804_s3 = inlined_call_operand.vmem [shape: f32[528,12], index: 3, kind: input, shape index: {}]   ;;  %s3805_s4 = inlined_call_operand.vmem [shape: f32[18,72], index: 4, kind: input, shape index: {}]   ;;  %s3806_s5 = inlined_call_operand.vmem [shape: f32[2,24,176], index: 5, kind: output, shape index: {0}]   ;;  %s3807_s6 = inlined_call_operand.vmem [shape: f32[2,3,1], index: 6, kind: output, shape index: {1}]   ;;  %s3808_s7 = inlined_call_operand.vmem [shape: f32[2,72,12], index: 7, kind: output, shape index: {2}]   ;;  %s3809_s8 = inlined_call_operand.vmem [shape: f32[2,18,528], index: 8, kind: output, shape index: {3}]  }
   0x1 LB: > { %s1966_s28 = sadd.s32 4294967295, %s2574_s27   ;;  %p1970_p0 = scmp.ge.s32.totalorder %s2574_s27, 1  ;;  %s2574_s27 = sphi %s2624_s27, %s19_s27  }
   0x2   : > { %p269_p1 = scmp.lt.s32.totalorder %s2574_s27, 3 }
   0x4   : > { %p270_p2 = pnand %p1970_p0, %p269_p1 }
   0x6   : > { %273 = sbr.rel (%p270_p2) target bundleno = 730 (0x2da), region = 40 }
   0xd   : > { %p317_p3 = scmp.lt.s32.totalorder %s1966_s28, 1  ;;  %v3810_v0 = vmov 0.0   ;;  %v2827_v52 = vld [vmem:[%s3803_s2] sm:$0xff]  ;;  %vm389_vm0 = vcmask 588800   ;;  %v3812_v58 = vmov 0.0|0.0   ;;  %v2856_v59 = vld [vmem:[%s3803_s2 + $0x8] sm:$0xff] }
   0xe   : > { %463 = vmatprep.mubr.f32.mxu0 %v3810_v0  ;;  %546 = vmatprep.mubr.f32.mxu1 %v3810_v0  ;;  %v646_v60 = vld [vmem:[%s3802_s1 + $0x8] sm:$0xff]  ;;  %v648_v61 = vld [vmem:[%s3802_s1 + $0x18] sm:$0xff]  ;;  %vm2578_vm1 = vmmov 0   ;;  %vm777_vm2 = vcmask 130048   ;;  %vm1466_vm3 = vcmask 97280   ;;  %vm1037_vm4 = vcmask 392192  }
   0xf   : > { %s3880_s28 = smov (!%p317_p3, %s1966_s28), 1  ;;  %vm1748_vm5 = vcmask 123904   ;;  %vm1807_vm6 = vcmask 1041409   ;;  %vm1809_vm7 = vcmask 1042434   ;;  %vm1812_vm8 = vcmask 2048  }
  0x10   : > { %s2547_s29 = smul.u32 360, %s3880_s28  ;;  %s1973_s12 = sshll.u32 %s3880_s28, 2 }
  0x11   : > { %s2550_s23 = smul.u32 120, %s3880_s28  ;;  %s330_s15 = scalar_lea.vmem %s3807_s6, %s1973_s12 }
  0x12   : > { %s2640_s10 = scalar_lea.vmem %s3801_s0, %s2547_s29  ;;  %s2548_s29 = smul.u32 48, %s3880_s28 }
  0x13   : > { %v2643_v1 = vld [vmem:[%s2640_s10 + $0x8] sm:$0xff]  ;;  %v2646_v2 = vld [vmem:[%s2640_s10 + $0x30] sm:$0xff]  ;;  %v2649_v3 = vld [vmem:[%s2640_s10] sm:$0xff]  ;;  %s3755_s26 = scalar_lea.vmem %s3809_s8, %s2550_s23 }
  0x14   : > { %v2653_v4 = vpack.c.bf16 %v2646_v2, %v2643_v1  ;;  %v2656_v5 = vld [vmem:[%s2640_s10 + $0x28] sm:$0xff]  ;;  %v2659_v6 = vld [vmem:[%s2640_s10 + $0x58] sm:$0xff]  ;;  %v2662_v7 = vld [vmem:[%s2640_s10 + $0x80] sm:$0xff]  ;;  %s326_s11 = scalar_lea.vmem %s3806_s5, %s2548_s29 }
  0x15   : > { %v2666_v8 = vpack.c.bf16 %v2656_v5, %v2649_v3  ;;  %v2670_v9 = vpack.c.bf16 %v2662_v7, %v2659_v6  ;;  %v2673_v10 = vld [vmem:[%s2640_s10 + $0x50] sm:$0xff]  ;;  %v2676_v11 = vld [vmem:[%s2640_s10 + $0x78] sm:$0xff]  ;;  %v2679_v12 = vld [vmem:[%s2640_s10 + $0xa8] sm:$0xff] }
  0x16   : > { %2247 = vmatprep.subr.bf16.mxu0 %v2653_v4  ;;  %v2683_v13 = vld [vmem:[%s2640_s10 + $0xd0] sm:$0xff]  ;;  %v2688_v14 = vpack.c.bf16 %v2676_v11, %v2673_v10  ;;  %v2691_v15 = vld [vmem:[%s2640_s10 + $0xa0] sm:$0xff]  ;;  %v2699_v17 = vld [vmem:[%s2640_s10 + $0xc8] sm:$0xff] }
  0x17   : > { %2249 = vmatpush1.bf16.msra.mxu0 %v2666_v8  ;;  %v2696_v16 = vpack.c.bf16 %v2683_v13, %v2679_v12  ;;  %v2702_v18 = vld [vmem:[%s2640_s10 + $0xf8] sm:$0xff]  ;;  %v2705_v19 = vld [vmem:[%s2640_s10 + $0x120] sm:$0xff]  ;;  %v2714_v22 = vld [vmem:[%s2640_s10 + $0x10] sm:$0xff]  ;;  %v2732_v27 = vpack.c.bf16 %v2699_v17, %v2691_v15 }
  0x18   : > { %3835 = vst [vmem:[#allocation2_spill] sm:$0xff] %v2688_v14  ;;  %2251 = vmatprep.subr.bf16.mxu0 %v2670_v9  ;;  %v2708_v20 = vld [vmem:[%s2640_s10 + $0x18] sm:$0xff]  ;;  %v2711_v21 = vld [vmem:[%s2640_s10 + $0x40] sm:$0xff]  ;;  %v2724_v25 = vld [vmem:[%s2640_s10 + $0x68] sm:$0xff]  ;;  %v2754_v33 = vpack.c.bf16 %v2705_v19, %v2702_v18 }
  0x19   : > { %3836 = vst [vmem:[#allocation3_spill] sm:$0xff] %v2696_v16  ;;  %v2718_v23 = vpack.c.bf16 %v2711_v21, %v2708_v20  ;;  %v2721_v24 = vld [vmem:[%s2640_s10 + $0x38] sm:$0xff]  ;;  %v2727_v26 = vld [vmem:[%s2640_s10 + $0x90] sm:$0xff]  ;;  %3838 = vst [vmem:[#allocation5_spill] sm:$0xff] %v2732_v27 }
  0x1a   : > { %v2736_v28 = vpack.c.bf16 %v2721_v24, %v2714_v22  ;;  %v2740_v29 = vpack.c.bf16 %v2727_v26, %v2724_v25  ;;  %v2743_v30 = vld [vmem:[%s2640_s10 + $0x60] sm:$0xff]  ;;  %v2746_v31 = vld [vmem:[%s2640_s10 + $0x88] sm:$0xff]  ;;  %v2749_v32 = vld [vmem:[%s2640_s10 + $0xb8] sm:$0xff]  ;;  %3841 = vst [vmem:[#allocation8_spill] sm:$0xff] %v2754_v33 }
  0x1b   : > { %3837 = vst [vmem:[#allocation4_spill] sm:$0xff] %v2718_v23  ;;  %2253 = vmatpush1.bf16.msra.mxu0 %v2688_v14  ;;  %v2757_v34 = vld [vmem:[%s2640_s10 + $0xf0] sm:$0xff]  ;;  %v2760_v35 = vld [vmem:[%s2640_s10 + $0x118] sm:$0xff]  ;;  %2263 = vmatprep.subr.bf16.mxu1 %v2718_v23  ;;  %v2764_v36 = vld [vmem:[%s2640_s10 + $0xe0] sm:$0xff]  ;;  %v2769_v37 = vpack.c.bf16 %v2746_v31, %v2743_v30 }
  0x1c   : > { %3839 = vst [vmem:[#allocation6_spill] sm:$0xff] %v2736_v28  ;;  %3840 = vst [vmem:[#allocation7_spill] sm:$0xff] %v2740_v29  ;;  %2255 = vmatprep.subr.bf16.mxu0 %v2696_v16  ;;  %2265 = vmatpush1.bf16.msra.mxu1 %v2736_v28  ;;  %v2774_v38 = vpack.c.bf16 %v2764_v36, %v2749_v32  ;;  %v2777_v39 = vld [vmem:[%s2640_s10 + $0xb0] sm:$0xff]  ;;  %v2780_v40 = vld [vmem:[%s2640_s10 + $0xd8] sm:$0xff]  ;;  %v2785_v41 = vpack.c.bf16 %v2760_v35, %v2757_v34 }
  0x1d   : > { %3842 = vst [vmem:[#allocation9_spill] sm:$0xff] %v2769_v37  ;;  %2267 = vmatprep.subr.bf16.mxu1 %v2740_v29  ;;  %v2788_v42 = vld [vmem:[%s2640_s10 + $0x108] sm:$0xff]  ;;  %v2791_v43 = vld [vmem:[%s2640_s10 + $0x130] sm:$0xff]  ;;  %v2800_v45 = vpack.c.bf16 %v2780_v40, %v2777_v39  ;;  %v2808_v47 = vld [vmem:[%s2640_s10 + $0x100] sm:$0xff] }
  0x1e   : > { %3843 = vst [vmem:[#allocation10_spill] sm:$0xff] %v2774_v38  ;;  %3844 = vst [vmem:[#allocation11_spill] sm:$0xff] %v2785_v41  ;;  %v2795_v44 = vld [vmem:[%s2640_s10 + $0x148] sm:$0xff]  ;;  %v2805_v46 = vpack.c.bf16 %v2791_v43, %v2788_v42  ;;  %v2815_v49 = vld [vmem:[%s2640_s10 + $0x20] sm:$0xff] }
  0x1f   : > { %2257 = vmatpush1.bf16.msra.mxu0 %v2732_v27  ;;  %3845 = vst [vmem:[#allocation12_spill] sm:$0xff] %v2800_v45  ;;  %v2811_v48 = vld [vmem:[%s2640_s10 + $0x128] sm:$0xff]  ;;  %v2822_v51 = vld [vmem:[%s2640_s10 + $0x140] sm:$0xff]  ;;  %v2841_v55 = vld [vmem:[%s2640_s10 + $0x158] sm:$0xff] }
  0x20   : > { %2259 = vmatprep.subr.bf16.mxu0 %v2754_v33  ;;  %2269 = vmatpush1.bf16.msra.mxu1 %v2769_v37  ;;  %3846 = vst [vmem:[#allocation13_spill] sm:$0xff] %v2805_v46  ;;  %v2818_v50 = vld [vmem:[%s2640_s10 + $0x48] sm:$0xff]  ;;  %v2832_v53 = vpack.c.bf16 %v2811_v48, %v2808_v47  ;;  %v2844_v56 = vld [vmem:[%s2640_s10 + $0x70] sm:$0xff]  ;;  %v2847_v57 = vld [vmem:[%s2640_s10 + $0x98] sm:$0xff]  ;;  %v3855_v37 = vmov 0.0  }
  0x21   : > { %2271 = vmatprep.subr.bf16.mxu1 %v2774_v38  ;;  %3847 = vst [vmem:[#allocation14_spill] sm:$0xff] %v2818_v50  ;;  %v2837_v54 = vpack.c.bf16 %v2818_v50, %v2815_v49  ;;  %3850 = vst [vmem:[#allocation17_spill] sm:$0xff] %v2844_v56  ;;  %v2868_v62 = vld [vmem:[%s2640_s10 + $0x150] sm:$0xff]  ;;  %v2872_v63 = vpack.c.bf16 %v2847_v57, %v2844_v56  ;;  %v2290_v38 = vpack.c.bf16 %v648_v61, %v646_v60  ;;  %v650_v23 = vld [vmem:[%s3802_s1 + $0x28] sm:$0xff] }
  0x22   : > { %3848 = vst [vmem:[#allocation15_spill] sm:$0xff] %v2832_v53  ;;  %3851 = vst [vmem:[#allocation18_spill] sm:$0xff] %v2847_v57  ;;  %v2891_v29 = vld [vmem:[%s3803_s2 + $0x10] sm:$0xff]  ;;  %v657_v56 = vld [vmem:[%s3802_s1 + $0x60] sm:$0xff] }
  0x23   : > { %2261 = vmatpush1.bf16.msra.mxu0 %v2785_v41  ;;  %3849 = vst [vmem:[#allocation16_spill] sm:$0xff] %v2837_v54  ;;  %3852 = vst [vmem:[#allocation19_spill] sm:$0xff] %v2872_v63  ;;  %v375_v61 = vld [vmem:[%s2640_s10 + $0x110] sm:$0xff]  ;;  %v380_v41 = vld [vmem:[%s2640_s10 + $0x138] sm:$0xff] }
  0x24   : > { %415 = vmatprep.subr.mxu0 %v2795_v44  ;;  %2273 = vmatpush1.bf16.msra.mxu1 %v2800_v45  ;;  %v370_v45 = vld [vmem:[%s2640_s10 + $0xe8] sm:$0xff]  ;;  %v659_v16 = vld [vmem:[%s3802_s1 + $0x70] sm:$0xff]  ;;  %v1046_v50 = vld [vmem:[%s3804_s3 + $0x18] sm:$0xff] }
  0x25   : > { %2275 = vmatprep.subr.bf16.mxu1 %v2805_v46  ;;  %v2882_v46 = vld [vmem:[%s2640_s10 + $0xc0] sm:$0xff]  ;;  %v1045_v14 = vld [vmem:[%s3804_s3 + $0x10] sm:$0xff] }
  0x26   : > { %3854 = vst [vmem:[#allocation20_spill] sm:$0xff] %v2882_v46  ;;  %v2904_v60 = vpack.c.bf16 %v370_v45, %v2882_v46  ;;  %v656_v46 = vld [vmem:[%s3802_s1 + $0x58] sm:$0xff] }
  0x27   : > { %416 = vmatpush1.msra.mxu0 %v2822_v51 }
  0x28   : > { %1976 = vmatmul.mubr.msk.f32.vlgmr.msra.gmra.mrb[0].mxu0 %vm389_vm0, %v2827_v52  ;;  %2278 = vmatprep.subr.bf16.mxu0 %v3812_v58  ;;  %v647_v58 = vld [vmem:[%s3802_s1 + $0x10] sm:$0xff]  ;;  %3856 = vst [vmem:[#allocation21_spill] sm:$0xff] %v2904_v60 }
  0x29   : > { %469 = vmatprep.mubr.f32.mxu0 %v3810_v0  ;;  %2277 = vmatpush1.bf16.msra.mxu1 %v2832_v53  ;;  %v645_v0 = vld [vmem:[%s3802_s1] sm:$0xff]  ;;  %v3853_v53 = vmov 0.0|0.0  }
  0x2a   : > { %2280 = vmatpush3.bf16.msra.mxu0 %v2837_v54  ;;  %498 = vmatprep.subr.mxu1 %v2841_v55  ;;  %v2292_v28 = vpack.c.bf16 %v647_v58, %v645_v0  ;;  %v652_v54 = vld [vmem:[%s3802_s1 + $0x38] sm:$0xff]  ;;  %v649_v0 = vld [vmem:[%s3802_s1 + $0x20] sm:$0xff]  ;;  %v651_v58 = vld [vmem:[%s3802_s1 + $0x30] sm:$0xff] }
  0x2b   : > { %2281 = vmatprep.subr.bf16.mxu0 %v3853_v53  ;;  %v2294_v45 = vpack.c.bf16 %v652_v54, %v650_v23  ;;  %v2296_v57 = vpack.c.bf16 %v651_v58, %v649_v0  ;;  %v2929_v23 = vpack.c.bf16 %v380_v41, %v375_v61  ;;  %v655_v54 = vld [vmem:[%s3802_s1 + $0x50] sm:$0xff]  ;;  %v658_v0 = vld [vmem:[%s3802_s1 + $0x68] sm:$0xff]  ;;  %v660_v41 = vld [vmem:[%s3802_s1 + $0x78] sm:$0xff] }
  0x2c   : > { %1977 = vmatmul.mubr.msk.f32.gmra.mrb[2].mxu0 %vm389_vm0, %v2856_v59  ;;  %v1059_v58 = vld [vmem:[%s3804_s3 + $0x80] sm:$0xff]  ;;  %v1060_v61 = vld [vmem:[%s3804_s3 + $0x88] sm:$0xff]  ;;  %v2302_v27 = vpack.c.bf16 %v660_v41, %v658_v0  ;;  %v664_v0 = vld [vmem:[%s3802_s1 + $0x98] sm:$0xff] }
  0x2d   : > { %475 = vmatprep.mubr.f32.mxu0 %v3855_v37  ;;  %499 = vmatpush1.msra.mxu1 %v2868_v62  ;;  %3857 = vst [vmem:[#allocation22_spill] sm:$0xff] %v2929_v23 }
  0x2e   : > { %1979 = vmatmul.mubr.msk.f32.vlgmr.msra.gmra.mrb[0].mxu1 %vm389_vm0, %v2827_v52  ;;  %2283 = vmatpush3.bf16.msra.mxu0 %v2872_v63  ;;  %v654_v63 = vld [vmem:[%s3802_s1 + $0x48] sm:$0xff] }
  0x2f   : > { %552 = vmatprep.mubr.f32.mxu1 %v3855_v37  ;;  %2284 = vmatprep.subr.bf16.mxu0 %v3853_v53 }
  0x30   : > { %1978 = vmatmul.mubr.msk.f32.gmra.mrb[4].mxu0 %vm389_vm0, %v2891_v29  ;;  %2291 = vmatprep.subr.bf16.mxu1 %v2290_v38  ;;  %v653_v38 = vld [vmem:[%s3802_s1 + $0x40] sm:$0xff] }
  0x31   : > { %2179 = vmatprep.mubr.msk.f32.mxu0 %vm2578_vm1, %v3855_v37  ;;  %2293 = vmatpush1.bf16.msra.mxu1 %v2292_v28  ;;  %v2298_v28 = vpack.c.bf16 %v656_v46, %v654_v63  ;;  %v1043_v46 = vld [vmem:[%s3804_s3] sm:$0xff]  ;;  %v1044_v63 = vld [vmem:[%s3804_s3 + $0x8] sm:$0xff]  ;;  %v2300_v33 = vpack.c.bf16 %v655_v54, %v653_v38  ;;  %v2422_v38 = vpack.c.bf16 %v1060_v61, %v1059_v58 }
  0x32   : > { %1980 = vmatmul.mubr.msk.f32.gmra.mrb[2].mxu1 %vm389_vm0, %v2856_v59  ;;  %2286 = vmatpush3.bf16.msra.mxu0 %v2904_v60  ;;  %v1061_v60 = vld [vmem:[%s3804_s3 + $0x90] sm:$0xff]  ;;  %v662_v54 = vld [vmem:[%s3802_s1 + $0x88] sm:$0xff]  ;;  %v2424_v41 = vpack.c.bf16 %v1044_v63, %v1043_v46  ;;  %v2304_v58 = vpack.c.bf16 %v659_v16, %v657_v56  ;;  %v661_v46 = vld [vmem:[%s3802_s1 + $0x80] sm:$0xff] }
  0x33   : > { %558 = vmatprep.mubr.f32.mxu1 %v3855_v37  ;;  %2287 = vmatprep.subr.bf16.mxu0 %v3853_v53  ;;  %v2306_v61 = vpack.c.bf16 %v664_v0, %v662_v54  ;;  %v663_v63 = vld [vmem:[%s3802_s1 + $0x90] sm:$0xff]  ;;  %v666_v16 = vld [vmem:[%s3802_s1 + $0xa8] sm:$0xff] }
  0x34   : > { %2295 = vmatprep.subr.bf16.mxu1 %v2294_v45  ;;  %v1062_v45 = vld [vmem:[%s3804_s3 + $0x98] sm:$0xff]  ;;  %v2308_v54 = vpack.c.bf16 %v663_v63, %v661_v46  ;;  %v667_v0 = vld [vmem:[%s3802_s1 + $0xb0] sm:$0xff]  ;;  %v1067_v46 = vld [vmem:[%s3804_s3 + $0xc0] sm:$0xff] }
  0x35   : > { %2297 = vmatpush1.bf16.msra.mxu1 %v2296_v57  ;;  %v2974_v57 = vld [vmem:[%s2640_s10 + $0x160] sm:$0xff] }
  0x36   : > { %1981 = vmatmul.mubr.msk.f32.gmra.mrb[4].mxu1 %vm389_vm0, %v2891_v29  ;;  %2289 = vmatpush3.bf16.msra.mxu0 %v2929_v23  ;;  %v2426_v23 = vpack.c.bf16 %v1062_v45, %v1061_v60  ;;  %v1064_v60 = vld [vmem:[%s3804_s3 + $0xa8] sm:$0xff] }
  0x37   : > { %2177 = vmatprep.subr.mxu0 %v3855_v37  ;;  %2299 = vmatprep.subr.bf16.mxu1 %v2298_v28  ;;  %v1063_v28 = vld [vmem:[%s3804_s3 + $0xa0] sm:$0xff]  ;;  %v1048_v45 = vld [vmem:[%s3804_s3 + $0x28] sm:$0xff] }
  0x38   : > { %v2430_v56 = vpack.c.bf16 %v1064_v60, %v1063_v28  ;;  %v672_v28 = vld [vmem:[%s3802_s1 + $0xd8] sm:$0xff] }
  0x39   : > { %2301 = vmatpush1.bf16.msra.mxu1 %v2300_v33  ;;  %v2428_v33 = vpack.c.bf16 %v1046_v50, %v1045_v14  ;;  %v1066_v14 = vld [vmem:[%s3804_s3 + $0xb8] sm:$0xff] }
  0x3a   : > { %2178 = vmatpush3.msra.mxu0 %v2974_v57  ;;  %2303 = vmatprep.subr.bf16.mxu1 %v2302_v27  ;;  %v668_v27 = vld [vmem:[%s3802_s1 + $0xb8] sm:$0xff] }
  0x3b   : > { %2180 = vmatmul.mubr.msk.f32.vlgmr.msra.gmra.mrb[6].mxu0 %vm389_vm0, %v2827_v52  ;;  %2423 = vmatprep.subr.bf16.mxu0 %v2422_v38  ;;  %v1047_v52 = vld [vmem:[%s3804_s3 + $0x20] sm:$0xff]  ;;  %v1065_v38 = vld [vmem:[%s3804_s3 + $0xb0] sm:$0xff]  ;;  %v2310_v50 = vpack.c.bf16 %v668_v27, %v666_v16  ;;  %v1068_v16 = vld [vmem:[%s3804_s3 + $0xc8] sm:$0xff] }
  0x3c   : > { %2182 = vmatprep.mubr.msk.f32.mxu0 %vm2578_vm1, %v3855_v37  ;;  %2425 = vmatpush3.bf16.msra.mxu0 %v2424_v41  ;;  %v670_v41 = vld [vmem:[%s3802_s1 + $0xc8] sm:$0xff]  ;;  %v2434_v60 = vpack.c.bf16 %v1066_v14, %v1065_v38  ;;  %v1051_v14 = vld [vmem:[%s3804_s3 + $0x40] sm:$0xff] }
  0x3d   : > { %2427 = vmatprep.subr.bf16.mxu0 %v2426_v23  ;;  %2305 = vmatpush1.bf16.msra.mxu1 %v2304_v58  ;;  %v665_v23 = vld [vmem:[%s3802_s1 + $0xa0] sm:$0xff]  ;;  %v2432_v58 = vpack.c.bf16 %v1048_v45, %v1047_v52  ;;  %v2314_v27 = vpack.c.bf16 %v672_v28, %v670_v41  ;;  %v674_v52 = vld [vmem:[%s3802_s1 + $0xe8] sm:$0xff]  ;;  %v676_v45 = vld [vmem:[%s3802_s1 + $0xf8] sm:$0xff] }
  0x3e   : > { %2307 = vmatprep.subr.bf16.mxu1 %v2306_v61  ;;  %v1049_v61 = vld [vmem:[%s3804_s3 + $0x30] sm:$0xff]  ;;  %v2312_v63 = vpack.c.bf16 %v667_v0, %v665_v23  ;;  %v2318_v0 = vpack.c.bf16 %v676_v45, %v674_v52  ;;  %v673_v41 = vld [vmem:[%s3802_s1 + $0xe0] sm:$0xff] }
  0x3f   : > { %2183 = vmatmul.mubr.msk.f32.gmra.mrb[8].mxu0 %vm389_vm0, %v2856_v59  ;;  %v1050_v59 = vld [vmem:[%s3804_s3 + $0x38] sm:$0xff]  ;;  %v675_v28 = vld [vmem:[%s3802_s1 + $0xf0] sm:$0xff]  ;;  %v677_v52 = vld [vmem:[%s3802_s1 + $0x100] sm:$0xff] }
  0x40   : > { %2185 = vmatprep.mubr.msk.f32.mxu0 %vm2578_vm1, %v3855_v37  ;;  %2429 = vmatpush3.bf16.msra.mxu0 %v2428_v33  ;;  %v669_v33 = vld [vmem:[%s3802_s1 + $0xc0] sm:$0xff]  ;;  %v2436_v38 = vpack.c.bf16 %v1050_v59, %v1049_v61  ;;  %v679_v45 = vld [vmem:[%s3802_s1 + $0x110] sm:$0xff] }
  0x41   : > { %2431 = vmatprep.subr.bf16.mxu0 %v2430_v56  ;;  %2309 = vmatpush1.bf16.msra.mxu1 %v2308_v54  ;;  %v671_v56 = vld [vmem:[%s3802_s1 + $0xd0] sm:$0xff]  ;;  %v2438_v54 = vpack.c.bf16 %v1068_v16, %v1067_v46  ;;  %v1071_v16 = vld [vmem:[%s3804_s3 + $0xe0] sm:$0xff] }
  0x42   : > { %2311 = vmatprep.subr.bf16.mxu1 %v2310_v50  ;;  %v1069_v50 = vld [vmem:[%s3804_s3 + $0xd0] sm:$0xff]  ;;  %v2316_v23 = vpack.c.bf16 %v671_v56, %v669_v33  ;;  %v1072_v33 = vld [vmem:[%s3804_s3 + $0xe8] sm:$0xff] }
  0x43   : > { %2186 = vmatmul.mubr.msk.f32.gmra.mrb[10].mxu0 %vm389_vm0, %v2891_v29  ;;  %v1052_v29 = vld [vmem:[%s3804_s3 + $0x48] sm:$0xff]  ;;  %v1053_v46 = vld [vmem:[%s3804_s3 + $0x50] sm:$0xff] }
  0x44   : > { %2433 = vmatpush3.bf16.msra.mxu0 %v2432_v58  ;;  %1200 = vmatprep.mubr.f32.mxu0 %v2643_v1  ;;  %v1070_v1 = vld [vmem:[%s3804_s3 + $0xd8] sm:$0xff]  ;;  %v678_v58 = vld [vmem:[%s3802_s1 + $0x108] sm:$0xff]  ;;  %v2440_v61 = vpack.c.bf16 %v1052_v29, %v1051_v14  ;;  %v2446_v29 = vpack.c.bf16 %v1072_v33, %v1071_v16  ;;  %v1057_v16 = vld [vmem:[%s3804_s3 + $0x70] sm:$0xff] }
  0x45   : > { %2435 = vmatprep.subr.bf16.mxu0 %v2434_v60  ;;  %2313 = vmatpush1.bf16.msra.mxu1 %v2312_v63  ;;  %v680_v60 = vld [vmem:[%s3802_s1 + $0x118] sm:$0xff]  ;;  %v2442_v59 = vpack.c.bf16 %v1070_v1, %v1069_v50  ;;  %v1055_v50 = vld [vmem:[%s3804_s3 + $0x60] sm:$0xff]  ;;  %v1073_v1 = vld [vmem:[%s3804_s3 + $0xf0] sm:$0xff] }
  0x46   : > { %2315 = vmatprep.subr.bf16.mxu1 %v2314_v27  ;;  %v1054_v63 = vld [vmem:[%s3804_s3 + $0x58] sm:$0xff]  ;;  %v2320_v27 = vpack.c.bf16 %v675_v28, %v673_v41  ;;  %v2322_v56 = vpack.c.bf16 %v680_v60, %v678_v58  ;;  %v681_v58 = vld [vmem:[%s3802_s1 + $0x120] sm:$0xff]  ;;  %v683_v60 = vld [vmem:[%s3802_s1 + $0x130] sm:$0xff] }
  0x47   : > { %v2444_v14 = vpack.c.bf16 %v1054_v63, %v1053_v46  ;;  %v1074_v41 = vld [vmem:[%s3804_s3 + $0xf8] sm:$0xff]  ;;  %v1091_v33 = vld [vmem:[%s3804_s3 + $0x180] sm:$0xff] }
  0x48   : > { %2437 = vmatpush3.bf16.msra.mxu0 %v2436_v38  ;;  %v682_v38 = vld [vmem:[%s3802_s1 + $0x128] sm:$0xff]  ;;  %v2450_v63 = vpack.c.bf16 %v1074_v41, %v1073_v1  ;;  %v1075_v1 = vld [vmem:[%s3804_s3 + $0x100] sm:$0xff]  ;;  %v1093_v41 = vld [vmem:[%s3804_s3 + $0x190] sm:$0xff] }
  0x49   : > { %2439 = vmatprep.subr.bf16.mxu0 %v2438_v54  ;;  %2317 = vmatpush1.bf16.msra.mxu1 %v2316_v23  ;;  %v684_v54 = vld [vmem:[%s3802_s1 + $0x138] sm:$0xff]  ;;  %v1056_v23 = vld [vmem:[%s3804_s3 + $0x68] sm:$0xff] }
  0x4a   : > { %2319 = vmatprep.subr.bf16.mxu1 %v2318_v0  ;;  %v2324_v0 = vpack.c.bf16 %v679_v45, %v677_v52  ;;  %v2326_v28 = vpack.c.bf16 %v684_v54, %v682_v38  ;;  %v2448_v46 = vpack.c.bf16 %v1056_v23, %v1055_v50  ;;  %v1092_v52 = vld [vmem:[%s3804_s3 + $0x188] sm:$0xff]  ;;  %v685_v38 = vld [vmem:[%s3802_s1 + $0x140] sm:$0xff]  ;;  %v687_v54 = vld [vmem:[%s3802_s1 + $0x150] sm:$0xff] }
  0x4b   : > { %v2454_v23 = vpack.c.bf16 %v1092_v52, %v1091_v33  ;;  %v1077_v33 = vld [vmem:[%s3804_s3 + $0x110] sm:$0xff]  ;;  %v1095_v52 = vld [vmem:[%s3804_s3 + $0x1a0] sm:$0xff] }
  0x4c   : > { %2441 = vmatpush3.bf16.msra.mxu0 %v2440_v61  ;;  %v686_v61 = vld [vmem:[%s3802_s1 + $0x148] sm:$0xff] }
  0x4d   : > { %2443 = vmatprep.subr.bf16.mxu0 %v2442_v59  ;;  %2321 = vmatpush1.bf16.msra.mxu1 %v2320_v27  ;;  %v688_v59 = vld [vmem:[%s3802_s1 + $0x158] sm:$0xff] }
  0x4e   : > { %2323 = vmatprep.subr.bf16.mxu1 %v2322_v56  ;;  %v1058_v27 = vld [vmem:[%s3804_s3 + $0x78] sm:$0xff]  ;;  %v2328_v56 = vpack.c.bf16 %v683_v60, %v681_v58  ;;  %v2330_v45 = vpack.c.bf16 %v688_v59, %v686_v61  ;;  %v689_v61 = vld [vmem:[%s3802_s1 + $0x160] sm:$0xff]  ;;  %v691_v59 = vld [vmem:[%s3802_s1 + $0x170] sm:$0xff] }
  0x4f   : > { %v2452_v50 = vpack.c.bf16 %v1058_v27, %v1057_v16  ;;  %v1094_v58 = vld [vmem:[%s3804_s3 + $0x198] sm:$0xff] }
  0x50   : > { %2445 = vmatpush3.bf16.msra.mxu0 %v2444_v14  ;;  %v690_v14 = vld [vmem:[%s3802_s1 + $0x168] sm:$0xff]  ;;  %v2458_v27 = vpack.c.bf16 %v1094_v58, %v1093_v41  ;;  %v1079_v41 = vld [vmem:[%s3804_s3 + $0x120] sm:$0xff] }
  0x51   : > { %2447 = vmatprep.subr.bf16.mxu0 %v2446_v29  ;;  %2325 = vmatpush1.bf16.msra.mxu1 %v2324_v0  ;;  %v692_v29 = vld [vmem:[%s3802_s1 + $0x178] sm:$0xff]  ;;  %v1076_v0 = vld [vmem:[%s3804_s3 + $0x108] sm:$0xff] }
  0x52   : > { %2327 = vmatprep.subr.bf16.mxu1 %v2326_v28  ;;  %v2332_v28 = vpack.c.bf16 %v687_v54, %v685_v38  ;;  %v2334_v60 = vpack.c.bf16 %v692_v29, %v690_v14  ;;  %v2456_v16 = vpack.c.bf16 %v1076_v0, %v1075_v1  ;;  %v1096_v38 = vld [vmem:[%s3804_s3 + $0x1a8] sm:$0xff]  ;;  %v693_v14 = vld [vmem:[%s3802_s1 + $0x180] sm:$0xff]  ;;  %v695_v29 = vld [vmem:[%s3802_s1 + $0x190] sm:$0xff] }
  0x53   : > { %v2462_v0 = vpack.c.bf16 %v1096_v38, %v1095_v52  ;;  %v2340_v58 = vpack.c.bf16 %v695_v29, %v693_v14  ;;  %v701_v38 = vld [vmem:[%s3802_s1 + $0x1c0] sm:$0xff]  ;;  %v706_v14 = vld [vmem:[%s3802_s1 + $0x1e8] sm:$0xff]  ;;  %v708_v29 = vld [vmem:[%s3802_s1 + $0x1f8] sm:$0xff] }
  0x54   : > { %2449 = vmatpush3.bf16.msra.mxu0 %v2448_v46  ;;  %v694_v46 = vld [vmem:[%s3802_s1 + $0x188] sm:$0xff] }
  0x55   : > { %2451 = vmatprep.subr.bf16.mxu0 %v2450_v63  ;;  %2329 = vmatpush1.bf16.msra.mxu1 %v2328_v56  ;;  %v696_v63 = vld [vmem:[%s3802_s1 + $0x198] sm:$0xff] }
  0x56   : > { %2331 = vmatprep.subr.bf16.mxu1 %v2330_v45  ;;  %v1078_v56 = vld [vmem:[%s3804_s3 + $0x118] sm:$0xff]  ;;  %v2336_v45 = vpack.c.bf16 %v691_v59, %v689_v61  ;;  %v2338_v54 = vpack.c.bf16 %v696_v63, %v694_v46  ;;  %v697_v61 = vld [vmem:[%s3802_s1 + $0x1a0] sm:$0xff]  ;;  %v699_v59 = vld [vmem:[%s3802_s1 + $0x1b0] sm:$0xff] }
  0x57   : > { %v2460_v1 = vpack.c.bf16 %v1078_v56, %v1077_v33  ;;  %v702_v46 = vld [vmem:[%s3802_s1 + $0x1c8] sm:$0xff]  ;;  %v704_v63 = vld [vmem:[%s3802_s1 + $0x1d8] sm:$0xff]  ;;  %v1081_v33 = vld [vmem:[%s3804_s3 + $0x130] sm:$0xff]  ;;  %v2344_v52 = vpack.c.bf16 %v699_v59, %v697_v61 }
  0x58   : > { %2453 = vmatpush3.bf16.msra.mxu0 %v2452_v50  ;;  %v698_v50 = vld [vmem:[%s3802_s1 + $0x1a8] sm:$0xff]  ;;  %v1099_v56 = vld [vmem:[%s3804_s3 + $0x1c0] sm:$0xff]  ;;  %v1085_v61 = vld [vmem:[%s3804_s3 + $0x150] sm:$0xff] }
  0x59   : > { %2455 = vmatprep.subr.bf16.mxu0 %v2454_v23  ;;  %2333 = vmatpush1.bf16.msra.mxu1 %v2332_v28  ;;  %v700_v23 = vld [vmem:[%s3802_s1 + $0x1b8] sm:$0xff]  ;;  %v1097_v28 = vld [vmem:[%s3804_s3 + $0x1b0] sm:$0xff] }
  0x5a   : > { %2335 = vmatprep.subr.bf16.mxu1 %v2334_v60  ;;  %v2342_v60 = vpack.c.bf16 %v700_v23, %v698_v50  ;;  %v1086_v59 = vld [vmem:[%s3804_s3 + $0x158] sm:$0xff] }
  0x5b   : > { %1201 = vmatmul.mubr.f32.vlgmr.msra.gmra.mrb[12].mxu0 %v2649_v3  ;;  %v1080_v3 = vld [vmem:[%s3804_s3 + $0x128] sm:$0xff] }
  0x5c   : > { %1205 = vmatprep.mubr.f32.mxu0 %v2646_v2  ;;  %2457 = vmatpush3.bf16.msra.mxu0 %v2456_v16  ;;  %v1098_v2 = vld [vmem:[%s3804_s3 + $0x1b8] sm:$0xff]  ;;  %v2464_v16 = vpack.c.bf16 %v1080_v3, %v1079_v41  ;;  %v2350_v3 = vpack.c.bf16 %v708_v29, %v706_v14  ;;  %v719_v14 = vld [vmem:[%s3802_s1 + $0x250] sm:$0xff] }
  0x5d   : > { %2459 = vmatprep.subr.bf16.mxu0 %v2458_v27  ;;  %2337 = vmatpush1.bf16.msra.mxu1 %v2336_v45  ;;  %v2466_v27 = vpack.c.bf16 %v1098_v2, %v1097_v28  ;;  %v2346_v45 = vpack.c.bf16 %v704_v63, %v702_v46  ;;  %v705_v28 = vld [vmem:[%s3802_s1 + $0x1e0] sm:$0xff]  ;;  %v2476_v63 = vpack.c.bf16 %v1086_v59, %v1085_v61 }
  0x5e   : > { %2339 = vmatprep.subr.bf16.mxu1 %v2338_v54  ;;  %v703_v54 = vld [vmem:[%s3802_s1 + $0x1d0] sm:$0xff] }
  0x5f   : > { %1206 = vmatmul.mubr.f32.gmra.mrb[14].mxu0 %v2656_v5  ;;  %v1082_v5 = vld [vmem:[%s3804_s3 + $0x138] sm:$0xff]  ;;  %v2348_v41 = vpack.c.bf16 %v703_v54, %v701_v38  ;;  %v717_v54 = vld [vmem:[%s3802_s1 + $0x240] sm:$0xff] }
  0x60   : > { %1210 = vmatprep.mubr.f32.mxu0 %v2659_v6  ;;  %2461 = vmatpush3.bf16.msra.mxu0 %v2460_v1  ;;  %v1100_v6 = vld [vmem:[%s3804_s3 + $0x1c8] sm:$0xff]  ;;  %v2468_v50 = vpack.c.bf16 %v1082_v5, %v1081_v33  ;;  %v1083_v1 = vld [vmem:[%s3804_s3 + $0x140] sm:$0xff]  ;;  %v1105_v5 = vld [vmem:[%s3804_s3 + $0x1f0] sm:$0xff] }
  0x61   : > { %2463 = vmatprep.subr.bf16.mxu0 %v2462_v0  ;;  %2341 = vmatpush1.bf16.msra.mxu1 %v2340_v58  ;;  %v2470_v23 = vpack.c.bf16 %v1100_v6, %v1099_v56  ;;  %v1101_v0 = vld [vmem:[%s3804_s3 + $0x1d0] sm:$0xff]  ;;  %v1088_v33 = vld [vmem:[%s3804_s3 + $0x168] sm:$0xff]  ;;  %v1090_v6 = vld [vmem:[%s3804_s3 + $0x178] sm:$0xff] }
  0x62   : > { %2343 = vmatprep.subr.bf16.mxu1 %v2342_v60  ;;  %v707_v58 = vld [vmem:[%s3802_s1 + $0x1f0] sm:$0xff] }
  0x63   : > { %1211 = vmatmul.mubr.f32.gmra.mrb[16].mxu0 %v2673_v10  ;;  %v1084_v10 = vld [vmem:[%s3804_s3 + $0x148] sm:$0xff]  ;;  %v2352_v46 = vpack.c.bf16 %v707_v58, %v705_v28  ;;  %v723_v28 = vld [vmem:[%s3802_s1 + $0x270] sm:$0xff] }
  0x64   : > { %1215 = vmatprep.mubr.f32.mxu0 %v2662_v7  ;;  %2465 = vmatpush3.bf16.msra.mxu0 %v2464_v16  ;;  %v1102_v7 = vld [vmem:[%s3804_s3 + $0x1d8] sm:$0xff]  ;;  %v2472_v2 = vpack.c.bf16 %v1084_v10, %v1083_v1 }
  0x65   : > { %2467 = vmatprep.subr.bf16.mxu0 %v2466_v27  ;;  %2345 = vmatpush1.bf16.msra.mxu1 %v2344_v52  ;;  %v2474_v60 = vpack.c.bf16 %v1102_v7, %v1101_v0  ;;  %v1087_v27 = vld [vmem:[%s3804_s3 + $0x160] sm:$0xff]  ;;  %v1089_v52 = vld [vmem:[%s3804_s3 + $0x170] sm:$0xff]  ;;  %v2364_v0 = vpack.c.bf16 %v719_v14, %v717_v54  ;;  %v746_v54 = vld [vmem:[%s3802_s1 + $0x328] sm:$0xff] }
  0x66   : > { %2347 = vmatprep.subr.bf16.mxu1 %v2346_v45  ;;  %v748_v14 = vld [vmem:[%s3802_s1 + $0x338] sm:$0xff] }
  0x67   : > { %1216 = vmatmul.mubr.f32.gmra.mrb[18].mxu0 %v2676_v11  ;;  %v1103_v11 = vld [vmem:[%s3804_s3 + $0x1e0] sm:$0xff] }
  0x68   : > { %1220 = vmatprep.mubr.f32.mxu0 %v2679_v12  ;;  %2469 = vmatpush3.bf16.msra.mxu0 %v2468_v50  ;;  %v1104_v12 = vld [vmem:[%s3804_s3 + $0x1e8] sm:$0xff] }
  0x69   : > { %2471 = vmatprep.subr.bf16.mxu0 %v2470_v23  ;;  %2349 = vmatpush1.bf16.msra.mxu1 %v2348_v41  ;;  %v2478_v16 = vpack.c.bf16 %v1104_v12, %v1103_v11  ;;  %v722_v50 = vld [vmem:[%s3802_s1 + $0x268] sm:$0xff]  ;;  %v724_v23 = vld [vmem:[%s3802_s1 + $0x278] sm:$0xff]  ;;  %v725_v12 = vld [vmem:[%s3802_s1 + $0x280] sm:$0xff] }
  0x6a   : > { %2351 = vmatprep.subr.bf16.mxu1 %v2350_v3  ;;  %v2366_v7 = vpack.c.bf16 %v724_v23, %v722_v50  ;;  %v721_v3 = vld [vmem:[%s3802_s1 + $0x260] sm:$0xff]  ;;  %v2390_v50 = vpack.c.bf16 %v748_v14, %v746_v54 }
  0x6b   : > { %1221 = vmatmul.mubr.f32.gmra.mrb[20].mxu0 %v2691_v15  ;;  %v2480_v15 = vpack.c.bf16 %v1088_v33, %v1087_v27  ;;  %v732_v27 = vld [vmem:[%s3802_s1 + $0x2b8] sm:$0xff]  ;;  %v745_v23 = vld [vmem:[%s3802_s1 + $0x320] sm:$0xff] }
  0x6c   : > { %1225 = vmatprep.mubr.f32.mxu0 %v2683_v13  ;;  %2473 = vmatpush3.bf16.msra.mxu0 %v2472_v2  ;;  %v1106_v13 = vld [vmem:[%s3804_s3 + $0x1f8] sm:$0xff]  ;;  %v726_v2 = vld [vmem:[%s3802_s1 + $0x288] sm:$0xff] }
  0x6d   : > { %2475 = vmatprep.subr.bf16.mxu0 %v2474_v60  ;;  %2353 = vmatpush1.bf16.msra.mxu1 %v2352_v46  ;;  %v2482_v56 = vpack.c.bf16 %v1106_v13, %v1105_v5  ;;  %v728_v60 = vld [vmem:[%s3802_s1 + $0x298] sm:$0xff]  ;;  %v2368_v46 = vpack.c.bf16 %v723_v28, %v721_v3  ;;  %v3462_v13 = vld [vmem:[%s3805_s4] sm:$0xff]  ;;  %v751_v28 = vld [vmem:[%s3802_s1 + $0x350] sm:$0xff] }
  0x6e   : > { %v2370_v11 = vpack.c.bf16 %v728_v60, %v726_v2  ;;  %v756_v2 = vld [vmem:[%s3802_s1 + $0x378] sm:$0xff] }
  0x6f   : > { %1226 = vmatmul.mubr.f32.gmra.mrb[22].mxu0 %v2699_v17  ;;  %v2484_v17 = vpack.c.bf16 %v1090_v6, %v1089_v52  ;;  %v729_v52 = vld [vmem:[%s3802_s1 + $0x2a0] sm:$0xff]  ;;  %v731_v6 = vld [vmem:[%s3802_s1 + $0x2b0] sm:$0xff] }
  0x70   : > { %1230 = vmatprep.mubr.f32.mxu0 %v2702_v18  ;;  %2477 = vmatpush3.bf16.msra.mxu0 %v2476_v63  ;;  %v1107_v18 = vld [vmem:[%s3804_s3 + $0x200] sm:$0xff]  ;;  %v727_v63 = vld [vmem:[%s3802_s1 + $0x290] sm:$0xff] }
  0x71   : > { %2479 = vmatprep.subr.bf16.mxu0 %v2478_v16  ;;  %v730_v16 = vld [vmem:[%s3802_s1 + $0x2a8] sm:$0xff] }
  0x73   : > { %1231 = vmatmul.mubr.f32.gmra.mrb[24].mxu0 %v2757_v34  ;;  %v1108_v34 = vld [vmem:[%s3804_s3 + $0x208] sm:$0xff] }
  0x74   : > { %1235 = vmatprep.mubr.f32.mxu0 %v2705_v19  ;;  %2481 = vmatpush3.bf16.msra.mxu0 %v2480_v15  ;;  %v710_v19 = vld [vmem:[%s3802_s1 + $0x208] sm:$0xff]  ;;  %v3337_v38 = vpack.c.bf16 %v1108_v34, %v1107_v18  ;;  %v2372_v15 = vpack.c.bf16 %v727_v63, %v725_v12  ;;  %v755_v12 = vld [vmem:[%s3802_s1 + $0x370] sm:$0xff] }
  0x75   : > { %2483 = vmatprep.subr.bf16.mxu0 %v2482_v56  ;;  %v2374_v56 = vpack.c.bf16 %v732_v27, %v730_v16  ;;  %v3476_v18 = vld [vmem:[%s3805_s4 + $0x8] sm:$0xff]  ;;  %v760_v16 = vld [vmem:[%s3802_s1 + $0x398] sm:$0xff] }
  0x76   : > { %v734_v34 = vld [vmem:[%s3802_s1 + $0x2c8] sm:$0xff] }
  0x77   : > { %1236 = vmatmul.mubr.f32.gmra.mrb[26].mxu0 %v2760_v35  ;;  %v712_v35 = vld [vmem:[%s3802_s1 + $0x218] sm:$0xff]  ;;  %v758_v63 = vld [vmem:[%s3802_s1 + $0x388] sm:$0xff] }
  0x78   : > { %1240 = vmatprep.mubr.f32.mxu0 %v2795_v44  ;;  %2485 = vmatpush3.bf16.msra.mxu0 %v2484_v17  ;;  %v2354_v45 = vpack.c.bf16 %v712_v35, %v710_v19  ;;  %v3867_v17 = vld [vmem:[#allocation16_spill] sm:$0xff]  ;;  %v736_v19 = vld [vmem:[%s3802_s1 + $0x2d8] sm:$0xff] }
  0x79   : > { %2486 = vmatprep.subr.bf16.mxu0 %v3853_v53 }
  0x7a   : > { %2355 = vmatprep.subr.bf16.mxu1 %v2354_v45  ;;  %v2376_v45 = vpack.c.bf16 %v731_v6, %v729_v52  ;;  %v759_v52 = vld [vmem:[%s3802_s1 + $0x390] sm:$0xff]  ;;  %v762_v6 = vld [vmem:[%s3802_s1 + $0x3a8] sm:$0xff] }
  0x7b   : > { %1241 = vmatmul.mubr.f32.gmra.mrb[28].mxu0 %v2822_v51 }
  0x7c   : > { %1310 = vmatprep.mubr.f32.mxu0 %v2708_v20  ;;  %v3859_v20 = vld [vmem:[#allocation2_spill] sm:$0xff] }
  0x7f   : > { %1311 = vmatmul.mubr.f32.vlgmr.msra.gmra.mrb[30].mxu0 %v2714_v22  ;;  %v3861_v22 = vld [vmem:[#allocation17_spill] sm:$0xff] }
  0x80   : > { %1315 = vmatprep.mubr.f32.mxu0 %v2711_v21  ;;  %2488 = vmatpush3.bf16.msra.mxu0 %v3337_v38  ;;  %v3860_v21 = vld [vmem:[#allocation3_spill] sm:$0xff] }
  0x81   : > { %2490 = vmatprep.subr.bf16.mxu0 %v2653_v4  ;;  %v3858_v4 = vld [vmem:[#allocation14_spill] sm:$0xff] }
  0x83   : > { %1316 = vmatmul.mubr.f32.gmra.mrb[32].mxu0 %v2721_v24  ;;  %v3862_v24 = vld [vmem:[#allocation5_spill] sm:$0xff] }
  0x84   : > { %1320 = vmatprep.mubr.f32.mxu0 %v2724_v25  ;;  %v3865_v25 = vld [vmem:[#allocation11_spill] sm:$0xff] }
  0x87   : > { %1321 = vmatmul.mubr.f32.gmra.mrb[34].mxu0 %v2743_v30  ;;  %v709_v30 = vld [vmem:[%s3802_s1 + $0x200] sm:$0xff] }
  0x88   : > { %1325 = vmatprep.mubr.f32.mxu0 %v2727_v26  ;;  %v3866_v26 = vld [vmem:[#allocation20_spill] sm:$0xff] }
  0x8b   : > { %1326 = vmatmul.mubr.f32.gmra.mrb[36].mxu0 %v2746_v31  ;;  %v711_v31 = vld [vmem:[%s3802_s1 + $0x210] sm:$0xff] }
  0x8c   : > { %1330 = vmatprep.mubr.f32.mxu0 %v2749_v32  ;;  %v714_v32 = vld [vmem:[%s3802_s1 + $0x228] sm:$0xff] }
  0x8f   : > { %1331 = vmatmul.mubr.f32.gmra.mrb[38].mxu0 %v2777_v39 }
  0x90   : > { %1335 = vmatprep.mubr.f32.mxu0 %v2764_v36  ;;  %v716_v36 = vld [vmem:[%s3802_s1 + $0x238] sm:$0xff] }
  0x93   : > { %1336 = vmatmul.mubr.f32.gmra.mrb[40].mxu0 %v2780_v40  ;;  %v2356_v40 = vpack.c.bf16 %v711_v31, %v709_v30 }
  0x94   : > { %1340 = vmatprep.mubr.f32.mxu0 %v2788_v42 }
  0x97   : > { %1341 = vmatmul.mubr.f32.gmra.mrb[42].mxu0 %v2808_v47  ;;  %v715_v47 = vld [vmem:[%s3802_s1 + $0x230] sm:$0xff] }
  0x98   : > { %1345 = vmatprep.mubr.f32.mxu0 %v2791_v43  ;;  %v2358_v43 = vpack.c.bf16 %v716_v36, %v714_v32  ;;  %v737_v36 = vld [vmem:[%s3802_s1 + $0x2e0] sm:$0xff] }
  0x9b   : > { %1346 = vmatmul.mubr.f32.gmra.mrb[44].mxu0 %v2811_v48  ;;  %v718_v48 = vld [vmem:[%s3802_s1 + $0x248] sm:$0xff] }
  0x9c   : > { %1350 = vmatprep.mubr.f32.mxu0 %v2841_v55 }
  0x9f   : > { %1351 = vmatmul.mubr.f32.gmra.mrb[46].mxu0 %v2868_v62 }
  0xa0   : > { %2192 = vmatprep.mubr.msk.f32.mxu0 %vm2578_vm1, %v3855_v37 }
  0xa3   : > { %2193 = vmatmul.mubr.msk.f32.vlgmr.msra.gmra.mrb[48].mxu0 %vm777_vm2, %v2815_v49  ;;  %v720_v49 = vld [vmem:[%s3802_s1 + $0x258] sm:$0xff] }
  0xa4   : > { %2195 = vmatprep.mubr.msk.f32.mxu0 %vm2578_vm1, %v3855_v37  ;;  %2492 = vmatpush1.bf16.msra.mxu0 %v2666_v8  ;;  %v3863_v8 = vld [vmem:[#allocation8_spill] sm:$0xff]  ;;  %v2362_v62 = vpack.c.bf16 %v720_v49, %v718_v48 }
  0xa5   : > { %2494 = vmatprep.subr.bf16.mxu0 %v2670_v9  ;;  %v3864_v9 = vld [vmem:[#allocation18_spill] sm:$0xff] }
  0xa7   : > { %2196 = vmatmul.mubr.msk.f32.gmra.mrb[50].mxu0 %vm777_vm2, %v3858_v4 }
  0xa8   : > { %2198 = vmatprep.mubr.msk.f32.mxu0 %vm2578_vm1, %v3855_v37  ;;  %2496 = vmatpush1.bf16.msra.mxu0 %v3859_v20  ;;  %v2378_v20 = vpack.c.bf16 %v736_v19, %v734_v34 }
  0xa9   : > { %2498 = vmatprep.subr.bf16.mxu0 %v3860_v21  ;;  %v733_v21 = vld [vmem:[%s3802_s1 + $0x2c0] sm:$0xff] }
  0xab   : > { %2199 = vmatmul.mubr.msk.f32.gmra.mrb[52].mxu0 %vm777_vm2, %v3861_v22  ;;  %v735_v22 = vld [vmem:[%s3802_s1 + $0x2d0] sm:$0xff] }
  0xac   : > { %2201 = vmatprep.mubr.msk.f32.mxu0 %vm2578_vm1, %v3855_v37  ;;  %2500 = vmatpush1.bf16.msra.mxu0 %v3862_v24  ;;  %v3868_v24 = vld [vmem:[#allocation19_spill] sm:$0xff]  ;;  %v2380_v30 = vpack.c.bf16 %v735_v22, %v733_v21  ;;  %v768_v21 = vld [vmem:[%s3802_s1 + $0x3d8] sm:$0xff] }
  0xad   : > { %2502 = vmatprep.subr.bf16.mxu0 %v3863_v8  ;;  %v3500_v8 = vld [vmem:[%s3805_s4 + $0x10] sm:$0x3] }
  0xaf   : > { %2202 = vmatmul.mubr.msk.f32.gmra.mrb[54].mxu0 %vm777_vm2, %v3864_v9  ;;  %v738_v9 = vld [vmem:[%s3802_s1 + $0x2e8] sm:$0xff] }
  0xb0   : > { %2204 = vmatprep.mubr.msk.f32.mxu0 %vm2578_vm1, %v3855_v37  ;;  %2504 = vmatpush1.bf16.msra.mxu0 %v3865_v25  ;;  %v740_v25 = vld [vmem:[%s3802_s1 + $0x2f8] sm:$0xff] }
  0xb1   : > { %1504 = vmatprep.subr.mxu0 %v2795_v44  ;;  %v713_v44 = vld [vmem:[%s3802_s1 + $0x220] sm:$0xff]  ;;  %v2382_v32 = vpack.c.bf16 %v740_v25, %v738_v9 }
  0xb3   : > { %2205 = vmatmul.mubr.msk.f32.gmra.mrb[56].mxu0 %vm777_vm2, %v3866_v26 }
  0xb4   : > { %1505 = vmatpush1.msra.mxu0 %v2822_v51  ;;  %1552 = vmatprep.mubr.f32.mxu0 %v3855_v37  ;;  %v2360_v51 = vpack.c.bf16 %v715_v47, %v713_v44 }
  0xb5   : > { %2521 = vmatprep.subr.bf16.mxu0 %v3853_v53 }
  0xb7   : > { %1997 = vmatmul.mubr.msk.f32.vlgmr.msra.gmra.mrb[58].mxu0 %vm389_vm0, %v3462_v13 }
  0xb8   : > { %2523 = vmatpush3.bf16.msra.mxu0 %v3867_v17  ;;  %1558 = vmatprep.mubr.f32.mxu0 %v3855_v37  ;;  %v764_v17 = vld [vmem:[%s3802_s1 + $0x3b8] sm:$0xff] }
  0xb9   : > { %2524 = vmatprep.subr.bf16.mxu0 %v3853_v53  ;;  %v2406_v19 = vpack.c.bf16 %v764_v17, %v762_v6  ;;  %v3872_v17 = vld [vmem:[#allocation6_spill] sm:$0xff] }
  0xbb   : > { %1998 = vmatmul.mubr.msk.f32.gmra.mrb[60].mxu0 %vm389_vm0, %v3476_v18 }
  0xbc   : > { %2526 = vmatpush3.bf16.msra.mxu0 %v3868_v24  ;;  %1564 = vmatprep.mubr.f32.mxu0 %v3855_v37 }
  0xbd   : > { %2527 = vmatprep.subr.bf16.mxu0 %v3853_v53 }
  0xbf   : > { %1999 = vmatmul.mubr.msk.f32.gmra.mrb[62].mxu0 %vm389_vm0, %v3500_v8 }
  0xc0   : > { %2237 = vmatprep.mubr.msk.f32.mxu0 %vm2578_vm1, %v3855_v37 }
  0xfb   : > { %v465_v39 = vpop.f32.mrb[0].mxu0 }
  0xfc   : > { %v467_v42 = vpop.f32.mrb[1].mxu0 }
  0xfd   : > { %851 = vmatprep.mubr.f32.mxu1 %v467_v42  ;;  %v742_v42 = vld [vmem:[%s3802_s1 + $0x308] sm:$0xff] }
  0xfe   : > { %852 = vmatmul.mubr.f32.vlgmr.msra.gmra.mrb[6].mxu1 %v465_v39  ;;  %v739_v39 = vld [vmem:[%s3802_s1 + $0x2f0] sm:$0xff] }
  0xff   : > { %2357 = vmatpush1.bf16.msra.mxu1 %v2356_v40  ;;  %v471_v55 = vpop.f32.mrb[2].mxu0  ;;  %v3869_v40 = vld [vmem:[#allocation21_spill] sm:$0xff]  ;;  %v2384_v47 = vpack.c.bf16 %v739_v39, %v737_v36  ;;  %v770_v36 = vld [vmem:[%s3802_s1 + $0x3e8] sm:$0xff] }
 0x100   : > { %2359 = vmatprep.subr.bf16.mxu1 %v2358_v43  ;;  %v473_v29 = vpop.f32.mrb[3].mxu0  ;;  %2529 = vmatpush3.bf16.msra.mxu0 %v3869_v40  ;;  %v744_v43 = vld [vmem:[%s3802_s1 + $0x318] sm:$0xff] }
 0x101   : > { %857 = vmatprep.mubr.f32.mxu1 %v473_v29  ;;  %v3425_v1 = vpop.f32.mrb[0].mxu1  ;;  %2530 = vmatprep.subr.bf16.mxu0 %v3853_v53  ;;  %v2386_v49 = vpack.c.bf16 %v744_v43, %v742_v42  ;;  %v772_v39 = vld [vmem:[%s3802_s1 + $0x3f8] sm:$0xff] }
 0x102   : > { %858 = vmatmul.mubr.f32.gmra.mrb[8].mxu1 %v471_v55  ;;  %v550_v10 = vpop.f32.mrb[1].mxu1  ;;  %v743_v55 = vld [vmem:[%s3802_s1 + $0x310] sm:$0xff] }
 0x103   : > { %2361 = vmatpush1.bf16.msra.mxu1 %v2360_v51  ;;  %v477_v41 = vpop.f32.mrb[4].mxu0  ;;  %v741_v51 = vld [vmem:[%s3802_s1 + $0x300] sm:$0xff] }
 0x104   : > { %2363 = vmatprep.subr.bf16.mxu1 %v2362_v62  ;;  %v479_v58 = vpop.f32.mrb[5].mxu0  ;;  %v3870_v62 = vld [vmem:[#allocation22_spill] sm:$0xff]  ;;  %v2388_v29 = vpack.c.bf16 %v743_v55, %v741_v51  ;;  %v774_v55 = vld [vmem:[%s3802_s1 + $0x408] sm:$0xff] }
 0x105   : > { %863 = vmatprep.mubr.f32.mxu1 %v479_v58  ;;  %v3439_v61 = vpop.f32.mrb[2].mxu1  ;;  %2532 = vmatpush3.bf16.msra.mxu0 %v3870_v62  ;;  %v754_v58 = vld [vmem:[%s3802_s1 + $0x368] sm:$0xff]  ;;  %v776_v62 = vld [vmem:[%s3802_s1 + $0x418] sm:$0xff] }
 0x106   : > { %864 = vmatmul.mubr.f32.gmra.mrb[10].mxu1 %v477_v41  ;;  %v3441_v59 = vpop.f32.mrb[3].mxu1  ;;  %2235 = vmatprep.subr.mxu0 %v3855_v37  ;;  %v752_v41 = vld [vmem:[%s3802_s1 + $0x358] sm:$0xff] }
 0x107   : > { %2365 = vmatpush1.bf16.msra.mxu1 %v2364_v0  ;;  %934 = vmatprep.mubr.f32.mxu1 %v550_v10  ;;  %v747_v10 = vld [vmem:[%s3802_s1 + $0x330] sm:$0xff]  ;;  %v750_v0 = vld [vmem:[%s3802_s1 + $0x348] sm:$0xff] }
 0x108   : > { %2367 = vmatprep.subr.bf16.mxu1 %v2366_v7  ;;  %v2392_v7 = vpack.c.bf16 %v747_v10, %v745_v23  ;;  %v2394_v3 = vpack.c.bf16 %v752_v41, %v750_v0  ;;  %v773_v23 = vld [vmem:[%s3802_s1 + $0x400] sm:$0xff]  ;;  %v775_v10 = vld [vmem:[%s3802_s1 + $0x410] sm:$0xff] }
 0x109   : > { %v3455_v33 = vpop.f32.mrb[4].mxu1  ;;  %2236 = vmatpush3.msra.mxu0 %v2974_v57  ;;  %v749_v57 = vld [vmem:[%s3802_s1 + $0x340] sm:$0xff] }
 0x10a   : > { %v3457_v5 = vpop.f32.mrb[5].mxu1  ;;  %2238 = vmatmul.mubr.msk.f32.vlgmr.msra.gmra.mrb[64].mxu0 %vm389_vm0, %v3462_v13  ;;  %v2396_v60 = vpack.c.bf16 %v751_v28, %v749_v57 }
 0x10b   : > { %2369 = vmatpush1.bf16.msra.mxu1 %v2368_v46  ;;  %2240 = vmatprep.mubr.msk.f32.mxu0 %vm2578_vm1, %v3855_v37  ;;  %v2398_v46 = vpack.c.bf16 %v756_v2, %v754_v58 }
 0x10c   : > { %2371 = vmatprep.subr.bf16.mxu1 %v2370_v11  ;;  %v753_v11 = vld [vmem:[%s3802_s1 + $0x360] sm:$0xff] }
 0x10d   : > { %v2400_v27 = vpack.c.bf16 %v755_v12, %v753_v11 }
 0x10e   : > { %v3486_v35 = vpop.f32.mrb[6].mxu0  ;;  %2241 = vmatmul.mubr.msk.f32.gmra.mrb[66].mxu0 %vm389_vm0, %v3476_v18 }
 0x10f   : > { %2373 = vmatpush1.bf16.msra.mxu1 %v2372_v15  ;;  %v2181_v4 = vpop.f32.mrb[7].mxu0  ;;  %2243 = vmatprep.mubr.msk.f32.mxu0 %vm2578_vm1, %v3855_v37  ;;  %v2402_v15 = vpack.c.bf16 %v760_v16, %v758_v63  ;;  %v3871_v63 = vld [vmem:[#allocation4_spill] sm:$0xff] }
 0x110   : > { %2375 = vmatprep.subr.bf16.mxu1 %v2374_v56  ;;  %v757_v56 = vld [vmem:[%s3802_s1 + $0x380] sm:$0xff]  ;;  %v763_v4 = vld [vmem:[%s3802_s1 + $0x3b0] sm:$0xff] }
 0x111   : > { %v2404_v34 = vpack.c.bf16 %v759_v52, %v757_v56  ;;  %v2562_v56 = vld [vmem:[%s2640_s10 + $0xe8] sm:$0xff] }
 0x112   : > { %v3510_v26 = vpop.f32.mrb[8].mxu0  ;;  %2244 = vmatmul.mubr.msk.f32.gmra.mrb[68].mxu0 %vm389_vm0, %v3500_v8 }
 0x113   : > { %2377 = vmatpush1.bf16.msra.mxu1 %v2376_v45  ;;  %v2184_v31 = vpop.f32.mrb[9].mxu0  ;;  %v761_v45 = vld [vmem:[%s3802_s1 + $0x3a0] sm:$0xff] }
 0x114   : > { %2379 = vmatprep.subr.bf16.mxu1 %v2378_v20  ;;  %v766_v20 = vld [vmem:[%s3802_s1 + $0x3c8] sm:$0xff]  ;;  %v2408_v24 = vpack.c.bf16 %v763_v4, %v761_v45  ;;  %v767_v31 = vld [vmem:[%s3802_s1 + $0x3d0] sm:$0xff] }
 0x115   : > { %v2410_v25 = vpack.c.bf16 %v768_v21, %v766_v20  ;;  %v3874_v21 = vld [vmem:[#allocation9_spill] sm:$0xff] }
 0x116   : > { %v3530_v44 = vpop.f32.mrb[10].mxu0 }
 0x117   : > { %2381 = vmatpush1.bf16.msra.mxu1 %v2380_v30  ;;  %v2187_v48 = vpop.f32.mrb[11].mxu0  ;;  %v765_v30 = vld [vmem:[%s3802_s1 + $0x3c0] sm:$0xff] }
 0x118   : > { %2383 = vmatprep.subr.bf16.mxu1 %v2382_v32  ;;  %v2412_v42 = vpack.c.bf16 %v767_v31, %v765_v30  ;;  %v769_v48 = vld [vmem:[%s3802_s1 + $0x3e0] sm:$0xff] }
 0x11b   : > { %2385 = vmatpush1.bf16.msra.mxu1 %v2384_v47  ;;  %v2414_v47 = vpack.c.bf16 %v772_v39, %v770_v36  ;;  %v3877_v39 = vld [vmem:[#allocation13_spill] sm:$0xff] }
 0x11c   : > { %2387 = vmatprep.subr.bf16.mxu1 %v2386_v49  ;;  %v771_v49 = vld [vmem:[%s3802_s1 + $0x3f0] sm:$0xff] }
 0x11d   : > { %v2416_v14 = vpack.c.bf16 %v771_v49, %v769_v48  ;;  %v3878_v48 = vld [vmem:[#allocation15_spill] sm:$0xff] }
 0x11f   : > { %2389 = vmatpush1.bf16.msra.mxu1 %v2388_v29 }
 0x120   : > { %2391 = vmatprep.subr.bf16.mxu1 %v2390_v50  ;;  %v2418_v50 = vpack.c.bf16 %v776_v62, %v774_v55 }
 0x123   : > { %2393 = vmatpush1.bf16.msra.mxu1 %v2392_v7  ;;  %v2420_v7 = vpack.c.bf16 %v775_v10, %v773_v23 }
 0x124   : > { %2395 = vmatprep.subr.bf16.mxu1 %v2394_v3 }
 0x127   : > { %2397 = vmatpush1.bf16.msra.mxu1 %v2396_v60 }
 0x128   : > { %2399 = vmatprep.subr.bf16.mxu1 %v2398_v46 }
 0x12b   : > { %2401 = vmatpush1.bf16.msra.mxu1 %v2400_v27 }
 0x12c   : > { %2403 = vmatprep.subr.bf16.mxu1 %v2402_v15 }
 0x12e   : > { %v2052_v22 = vpop.f32.mrb[12].mxu0 }
 0x12f   : > { %2405 = vmatpush1.bf16.msra.mxu1 %v2404_v34  ;;  %v2053_v9 = vpop.f32.mrb[13].mxu0  ;;  %v3873_v34 = vld [vmem:[#allocation7_spill] sm:$0xff] }
 0x130   : > { %2407 = vmatprep.subr.bf16.mxu1 %v2406_v19  ;;  %v3623_v32 = vadd.f32 %v2053_v9, %v2052_v22  ;;  %v2563_v19 = vld [vmem:[%s2640_s10 + $0x110] sm:$0xff]  ;;  %v2564_v9 = vld [vmem:[%s2640_s10 + $0x138] sm:$0xff] }
 0x132   : > { %v2055_v40 = vpop.f32.mrb[14].mxu0 }
 0x133   : > { %2409 = vmatpush1.bf16.msra.mxu1 %v2408_v24  ;;  %v2056_v43 = vpop.f32.mrb[15].mxu0  ;;  %v3875_v24 = vld [vmem:[#allocation10_spill] sm:$0xff] }
 0x134   : > { %2411 = vmatprep.subr.bf16.mxu1 %v2410_v25  ;;  %v3637_v51 = vadd.f32 %v2056_v43, %v2055_v40  ;;  %v2565_v40 = vld [vmem:[%s2640_s10 + $0x160] sm:$0xff] }
 0x136   : > { %v2058_v54 = vpop.f32.mrb[16].mxu0 }
 0x137   : > { %2413 = vmatpush1.bf16.msra.mxu1 %v2412_v42  ;;  %v2059_v29 = vpop.f32.mrb[17].mxu0 }
 0x138   : > { %2415 = vmatprep.subr.bf16.mxu1 %v2414_v47  ;;  %v2060_v0 = vadd.f32 %v2059_v29, %v2058_v54 }
 0x13a   : > { %v2061_v41 = vpop.f32.mrb[18].mxu0 }
 0x13b   : > { %2417 = vmatpush1.bf16.msra.mxu1 %v2416_v14  ;;  %v2062_v3 = vpop.f32.mrb[19].mxu0  ;;  %v2567_v14 = vld [vmem:[%s2640_s10 + $0x150] sm:$0xff] }
 0x13c   : > { %2419 = vmatprep.subr.bf16.mxu1 %v2418_v50  ;;  %v3651_v57 = vadd.f32 %v2062_v3, %v2061_v41 }
 0x13e   : > { %935 = vmatmul.mubr.f32.vlgmr.msra.gmra.mrb[6].mxu1 %v3425_v1  ;;  %v2064_v28 = vpop.f32.mrb[20].mxu0 }
 0x13f   : > { %2421 = vmatpush1.bf16.msra.mxu1 %v2420_v7  ;;  %940 = vmatprep.mubr.f32.mxu1 %v3441_v59  ;;  %v2065_v58 = vpop.f32.mrb[21].mxu0 }
 0x140   : > { %2533 = vmatprep.subr.bf16.mxu1 %v3853_v53  ;;  %v3656_v2 = vadd.f32 %v2065_v58, %v2064_v28 }
 0x142   : > { %941 = vmatmul.mubr.f32.gmra.mrb[8].mxu1 %v3439_v61  ;;  %v2067_v60 = vpop.f32.mrb[22].mxu0 }
 0x143   : > { %946 = vmatprep.mubr.f32.mxu1 %v3457_v5  ;;  %v2068_v46 = vpop.f32.mrb[23].mxu0 }
 0x144   : > { %v3660_v11 = vadd.f32 %v2068_v46, %v2067_v60 }
 0x146   : > { %947 = vmatmul.mubr.f32.gmra.mrb[10].mxu1 %v3455_v33  ;;  %v2070_v1 = vpop.f32.mrb[24].mxu0 }
 0x147   : > { %1017 = vmatprep.mubr.f32.mxu1 %v3855_v37  ;;  %v2071_v12 = vpop.f32.mrb[25].mxu0 }
 0x148   : > { %v3664_v59 = vadd.f32 %v2071_v12, %v2070_v1 }
 0x14a   : > { %1985 = vmatmul.mubr.msk.f32.vlgmr.msra.gmra.mrb[6].mxu1 %vm777_vm2, %v3486_v35  ;;  %v2073_v53 = vpop.f32.mrb[26].mxu0 }
 0x14b   : > { %2534 = vmatpush3.bf16.msra.mxu1 %v3337_v38  ;;  %1023 = vmatprep.mubr.f32.mxu1 %v3855_v37  ;;  %v2074_v61 = vpop.f32.mrb[27].mxu0 }
 0x14c   : > { %v3670_v5 = vadd.f32 %v2074_v61, %v2073_v53  ;;  %2506 = vmatprep.subr.bf16.mxu1 %v3871_v63 }
 0x14e   : > { %1986 = vmatmul.mubr.msk.f32.gmra.mrb[8].mxu1 %vm777_vm2, %v3510_v26  ;;  %v2076_v33 = vpop.f32.mrb[28].mxu0 }
 0x14f   : > { %1029 = vmatprep.mubr.f32.mxu1 %v3855_v37  ;;  %v2077_v16 = vpop.f32.mrb[29].mxu0 }
 0x150   : > { %v3676_v35 = vadd.f32 %v2077_v16, %v2076_v33 }
 0x152   : > { %1987 = vmatmul.mubr.msk.f32.gmra.mrb[10].mxu1 %vm777_vm2, %v3530_v44  ;;  %v2111_v38 = vpop.f32.mrb[30].mxu0 }
 0x153   : > { %2207 = vmatprep.mubr.msk.f32.mxu1 %vm2578_vm1, %v3855_v37  ;;  %v2112_v27 = vpop.f32.mrb[31].mxu0 }
 0x154   : > { %v2113_v15 = vadd.f32 %v2112_v27, %v2111_v38 }
 0x156   : > { %2208 = vmatmul.mubr.msk.f32.vlgmr.msra.gmra.mrb[12].mxu1 %vm777_vm2, %v2562_v56  ;;  %v2114_v26 = vpop.f32.mrb[32].mxu0  ;;  %v1313_v52 = vadd.f32 %v2113_v15, %v3623_v32  ;;  %v3876_v32 = vld [vmem:[#allocation12_spill] sm:$0xff] }
 0x157   : > { %2210 = vmatprep.mubr.msk.f32.mxu1 %vm2578_vm1, %v3855_v37  ;;  %v2115_v6 = vpop.f32.mrb[33].mxu0  ;;  %2508 = vmatpush1.bf16.msra.mxu1 %v3872_v17 }
 0x158   : > { %v2116_v44 = vadd.f32 %v2115_v6, %v2114_v26  ;;  %2510 = vmatprep.subr.bf16.mxu1 %v3873_v34 }
 0x15a   : > { %2211 = vmatmul.mubr.msk.f32.gmra.mrb[14].mxu1 %vm777_vm2, %v2563_v19  ;;  %v2117_v45 = vpop.f32.mrb[34].mxu0  ;;  %v1318_v4 = vadd.f32 %v2116_v44, %v3637_v51  ;;  %v2566_v51 = vld [vmem:[%s2640_s10 + $0x158] sm:$0xff]  ;;  %s2549_s10 = smul.u32 72, %s3880_s28 }
 0x15b   : > { %2213 = vmatprep.mubr.msk.f32.mxu1 %vm2578_vm1, %v3855_v37  ;;  %v2118_v20 = vpop.f32.mrb[35].mxu0  ;;  %2512 = vmatpush1.bf16.msra.mxu1 %v3874_v21 }
 0x15c   : > { %v2119_v22 = vadd.f32 %v2118_v20, %v2117_v45  ;;  %2514 = vmatprep.subr.bf16.mxu1 %v3875_v24  ;;  %s3731_s22 = scalar_lea.vmem %s3808_s7, %s2549_s10 }
 0x15e   : > { %2214 = vmatmul.mubr.msk.f32.gmra.mrb[16].mxu1 %vm777_vm2, %v2564_v9  ;;  %v2120_v25 = vpop.f32.mrb[36].mxu0  ;;  %v1323_v30 = vadd.f32 %v2119_v22, %v2060_v0 }
 0x15f   : > { %2216 = vmatprep.mubr.msk.f32.mxu1 %vm2578_vm1, %v3855_v37  ;;  %v2121_v31 = vpop.f32.mrb[37].mxu0  ;;  %2516 = vmatpush1.bf16.msra.mxu1 %v3876_v32 }
 0x160   : > { %v2122_v36 = vadd.f32 %v2121_v31, %v2120_v25  ;;  %2518 = vmatprep.subr.bf16.mxu1 %v3877_v39 }
 0x162   : > { %2217 = vmatmul.mubr.msk.f32.gmra.mrb[18].mxu1 %vm777_vm2, %v2565_v40  ;;  %v2123_v42 = vpop.f32.mrb[38].mxu0  ;;  %v1328_v43 = vadd.f32 %v2122_v36, %v3651_v57 }
 0x163   : > { %v2124_v47 = vpop.f32.mrb[39].mxu0  ;;  %2520 = vmatpush1.bf16.msra.mxu1 %v3878_v48  ;;  %1635 = vmatprep.mubr.f32.mxu1 %v3855_v37 }
 0x164   : > { %v2125_v49 = vadd.f32 %v2124_v47, %v2123_v42  ;;  %1587 = vmatprep.subr.mxu1 %v2566_v51 }
 0x166   : > { %v2126_v55 = vpop.f32.mrb[40].mxu0  ;;  %v1333_v62 = vadd.f32 %v2125_v49, %v3656_v2 }
 0x167   : > { %v2127_v54 = vpop.f32.mrb[41].mxu0  ;;  %1588 = vmatpush1.msra.mxu1 %v2567_v14 }
 0x168   : > { %v2128_v29 = vadd.f32 %v2127_v54, %v2126_v55  ;;  %2000 = vmatmul.mubr.msk.f32.vlgmr.msra.gmra.mrb[20].mxu1 %vm389_vm0, %v3462_v13 }
 0x169   : > { %1641 = vmatprep.mubr.f32.mxu1 %v3855_v37 }
 0x16a   : > { %v2129_v50 = vpop.f32.mrb[42].mxu0  ;;  %v3716_v0 = vadd.f32 %v2128_v29, %v3660_v11 }
 0x16b   : > { %v2130_v23 = vpop.f32.mrb[43].mxu0 }
 0x16c   : > { %v2131_v10 = vadd.f32 %v2130_v23, %v2129_v50  ;;  %2001 = vmatmul.mubr.msk.f32.gmra.mrb[22].mxu1 %vm389_vm0, %v3476_v18 }
 0x16d   : > { %1647 = vmatprep.mubr.f32.mxu1 %v3855_v37 }
 0x16e   : > { %v2132_v41 = vpop.f32.mrb[44].mxu0  ;;  %v3722_v13 = vadd.f32 %v2131_v10, %v3664_v59 }
 0x16f   : > { %v2133_v7 = vpop.f32.mrb[45].mxu0 }
 0x170   : > { %v2134_v3 = vadd.f32 %v2133_v7, %v2132_v41  ;;  %2002 = vmatmul.mubr.msk.f32.gmra.mrb[24].mxu1 %vm389_vm0, %v3500_v8 }
 0x172   : > { %v2135_v57 = vpop.f32.mrb[46].mxu0  ;;  %v3726_v18 = vadd.f32 %v2134_v3, %v3670_v5 }
 0x173   : > { %v2136_v28 = vpop.f32.mrb[47].mxu0 }
 0x174   : > { %v2137_v58 = vadd.f32 %v2136_v28, %v2135_v57 }
 0x176   : > { %v1422_v37 = vpop.f32.mrb[48].mxu0  ;;  %v3734_v60 = vadd.f32 %v2137_v58, %v3676_v35 }
 0x177   : > { %v1423_v8 = vadd.f32 %v1422_v37, %v1313_v52  ;;  %v2194_v2 = vpop.f32.mrb[49].mxu0 }
 0x179   : > { %1467 = vst.msk [vmem:[%s3731_s22] sm:$0xff] %vm1466_vm3, %v1423_v8  ;;  %v1750_v46 = vsel %vm1466_vm3, %v1423_v8, 0.0 }
 0x17a   : > { %v1427_v11 = vpop.f32.mrb[50].mxu0  ;;  %1751 = vadd.xlane.f32.xlu0 %v1750_v46 }
 0x17b   : > { %v1428_v1 = vadd.f32 %v1427_v11, %v1318_v4  ;;  %v2197_v12 = vpop.f32.mrb[51].mxu0 }
 0x17d   : > { %1468 = vst.msk [vmem:[%s3731_s22 + $0x8] sm:$0xff] %vm1466_vm3, %v1428_v1  ;;  %v1753_v59 = vsel %vm1466_vm3, %v1428_v1, 0.0 }
 0x17e   : > { %v1432_v53 = vpop.f32.mrb[52].mxu0  ;;  %1754 = vadd.xlane.f32.xlu0 %v1753_v59 }
 0x17f   : > { %v1433_v61 = vadd.f32 %v1432_v53, %v1323_v30  ;;  %v2200_v5 = vpop.f32.mrb[53].mxu0 }
 0x181   : > { %1469 = vst.msk [vmem:[%s3731_s22 + $0x10] sm:$0xff] %vm1466_vm3, %v1433_v61  ;;  %v1756_v63 = vsel %vm1466_vm3, %v1433_v61, 0.0 }
 0x182   : > { %1757 = vadd.xlane.f32.xlu0 %v1756_v63  ;;  %v1437_v33 = vpop.f32.mrb[54].mxu0 }
 0x183   : > { %v1438_v16 = vadd.f32 %v1437_v33, %v1328_v43  ;;  %v2203_v35 = vpop.f32.mrb[55].mxu0 }
 0x185   : > { %1470 = vst.msk [vmem:[%s3731_s22 + $0x18] sm:$0xff] %vm1466_vm3, %v1438_v16  ;;  %v1759_v38 = vsel %vm1466_vm3, %v1438_v16, 0.0 }
 0x186   : > { %v1442_v27 = vpop.f32.mrb[56].mxu0  ;;  %1760 = vadd.xlane.f32.xlu1 %v1759_v38 }
 0x187   : > { %v1443_v15 = vadd.f32 %v1442_v27, %v1333_v62  ;;  %v2206_v56 = vpop.f32.mrb[57].mxu0 }
 0x189   : > { %1471 = vst.msk [vmem:[%s3731_s22 + $0x20] sm:$0xff] %vm1466_vm3, %v1443_v15  ;;  %v1762_v26 = vsel %vm1466_vm3, %v1443_v15, 0.0 }
 0x18a   : > { %1763 = vadd.xlane.f32.xlu1 %v1762_v26  ;;  %v1554_v52 = vpop.f32.mrb[58].mxu0 }
 0x18b   : > { %1734 = vst [vmem:[%s3755_s26] sm:$0xff] %v1554_v52  ;;  %v1556_v48 = vpop.f32.mrb[59].mxu0 }
 0x18c   : > { %1735 = vst [vmem:[%s3755_s26 + $0x8] sm:$0xff] %v1556_v48 }
 0x18e   : > { %v1560_v49 = vpop.f32.mrb[60].mxu0 }
 0x18f   : > { %1739 = vst [vmem:[%s3755_s26 + $0x28] sm:$0xff] %v1560_v49  ;;  %v1562_v51 = vpop.f32.mrb[61].mxu0 }
 0x190   : > { %1740 = vst [vmem:[%s3755_s26 + $0x30] sm:$0xff] %v1562_v51 }
 0x192   : > { %v1566_v55 = vpop.f32.mrb[62].mxu0 }
 0x193   : > { %1744 = vst [vmem:[%s3755_s26 + $0x50] sm:$0x3] %v1566_v55  ;;  %v1568_v62 = vpop.f32.mrb[63].mxu0 }
 0x194   : > { %1745 = vst [vmem:[%s3755_s26 + $0x58] sm:$0x3] %v1568_v62 }
 0x1dd   : > { %v1720_v29 = vpop.f32.mrb[64].mxu0 }
 0x1de   : > { %1738 = vst.msk [vmem:[%s3755_s26 + $0x20] sm:$0xff] %vm777_vm2, %v1720_v29  ;;  %v2239_v50 = vpop.f32.mrb[65].mxu0 }
 0x207   : > { %v1752_v28 = vpop.xlane.xlu0 %1751 }
 0x20b   : > { %v1755_v58 = vpop.xlane.xlu0 %1754 }
 0x20f   : > { %v1758_v37 = vpop.xlane.xlu0 %1757 }
 0x213   : > { %v1761_v2 = vpop.xlane.xlu1 %1760 }
 0x217   : > { %v1764_v46 = vpop.xlane.xlu1 %1763 }
 0x218   : > { %v1785_v53 = vadd.f32 %v1764_v46, %v1761_v2 }
 0x21d   : > { %v1019_v6 = vpop.f32.mrb[6].mxu1 }
 0x21e   : > { %1036 = vst [vmem:[%s326_s11] sm:$0xff] %v1019_v6  ;;  %v1021_v17 = vpop.f32.mrb[7].mxu1 }
 0x21f   : > { %1038 = vst.msk [vmem:[%s326_s11 + $0x8] sm:$0xff] %vm1037_vm4, %v1021_v17 }
 0x221   : > { %v1025_v44 = vpop.f32.mrb[8].mxu1 }
 0x222   : > { %1039 = vst [vmem:[%s326_s11 + $0x10] sm:$0xff] %v1025_v44  ;;  %v1027_v34 = vpop.f32.mrb[9].mxu1 }
 0x223   : > { %1040 = vst.msk [vmem:[%s326_s11 + $0x18] sm:$0xff] %vm1037_vm4, %v1027_v34 }
 0x225   : > { %v1031_v19 = vpop.f32.mrb[10].mxu1 }
 0x226   : > { %1041 = vst [vmem:[%s326_s11 + $0x20] sm:$0xff] %v1031_v19  ;;  %v1033_v45 = vpop.f32.mrb[11].mxu1 }
 0x227   : > { %1042 = vst.msk [vmem:[%s326_s11 + $0x28] sm:$0xff] %vm1037_vm4, %v1033_v45 }
 0x229   : > { %v1447_v4 = vpop.f32.mrb[12].mxu1 }
 0x22a   : > { %v1448_v20 = vadd.f32 %v1447_v4, %v3716_v0  ;;  %v2209_v21 = vpop.f32.mrb[13].mxu1  ;;  %v1725_v0 = vpop.f32.mrb[66].mxu0 }
 0x22b   : > { %1743 = vst.msk [vmem:[%s3755_s26 + $0x48] sm:$0xff] %vm777_vm2, %v1725_v0  ;;  %v2242_v41 = vpop.f32.mrb[67].mxu0 }
 0x22c   : > { %1472 = vst.msk [vmem:[%s3731_s22 + $0x28] sm:$0xff] %vm1466_vm3, %v1448_v20  ;;  %v1765_v43 = vsel %vm1466_vm3, %v1448_v20, 0.0 }
 0x22d   : > { %v1452_v22 = vpop.f32.mrb[14].mxu1 }
 0x22e   : > { %v1453_v24 = vadd.f32 %v1452_v22, %v3722_v13  ;;  %v2212_v9 = vpop.f32.mrb[15].mxu1  ;;  %v1730_v13 = vpop.f32.mrb[68].mxu0 }
 0x22f   : > { %v2245_v57 = vpop.f32.mrb[69].mxu0  ;;  %1749 = vst.msk [vmem:[%s3755_s26 + $0x70] sm:$0x3] %vm1748_vm5, %v1730_v13 }
 0x230   : > { %1473 = vst.msk [vmem:[%s3731_s22 + $0x30] sm:$0xff] %vm1466_vm3, %v1453_v24  ;;  %v1768_v25 = vsel %vm1466_vm3, %v1453_v24, 0.0 }
 0x231   : > { %v1457_v30 = vpop.f32.mrb[16].mxu1  ;;  %1769 = vadd.xlane.f32.xlu0 %v1768_v25 }
 0x232   : > { %v1458_v31 = vadd.f32 %v1457_v30, %v3726_v18  ;;  %v2215_v32 = vpop.f32.mrb[17].mxu1  ;;  %v1777_v18 = vadd.f32 %v1755_v58, %v1752_v28 }
 0x234   : > { %1474 = vst.msk [vmem:[%s3731_s22 + $0x38] sm:$0xff] %vm1466_vm3, %v1458_v31  ;;  %v1771_v36 = vsel %vm1466_vm3, %v1458_v31, 0.0  ;;  %v1778_v8 = vadd.f32 %v1777_v18, %v1758_v37 }
 0x235   : > { %v1462_v39 = vpop.f32.mrb[18].mxu1  ;;  %1772 = vadd.xlane.f32.xlu1 %v1771_v36 }
 0x236   : > { %v1463_v40 = vadd.f32 %v1462_v39, %v3734_v60  ;;  %v2218_v42 = vpop.f32.mrb[19].mxu1  ;;  %v1779_v60 = vrot.slane %v1778_v8, 4 }
 0x238   : > { %1475 = vst.msk [vmem:[%s3731_s22 + $0x40] sm:$0xff] %vm1466_vm3, %v1463_v40  ;;  %v1774_v47 = vsel %vm1466_vm3, %v1463_v40, 0.0  ;;  %v1780_v11 = vadd.f32 %v1779_v60, %v1778_v8 }
 0x239   : > { %1766 = vadd.xlane.f32.xlu1 %v1765_v43  ;;  %1775 = vadd.xlane.f32.xlu0 %v1774_v47 }
 0x23a   : > { %v1781_v59 = vrot.slane %v1780_v11, 2 }
 0x23b   : > { %v1637_v54 = vpop.f32.mrb[20].mxu1 }
 0x23c   : > { %1736 = vst [vmem:[%s3755_s26 + $0x10] sm:$0xff] %v1637_v54  ;;  %v1639_v14 = vpop.f32.mrb[21].mxu1  ;;  %v1782_v35 = vadd.f32 %v1781_v59, %v1780_v11 }
 0x23d   : > { %1737 = vst [vmem:[%s3755_s26 + $0x18] sm:$0xff] %v1639_v14 }
 0x23e   : > { %v1783_v26 = vrot.slane %v1782_v35, 1 }
 0x23f   : > { %v1643_v23 = vpop.f32.mrb[22].mxu1 }
 0x240   : > { %1741 = vst [vmem:[%s3755_s26 + $0x38] sm:$0xff] %v1643_v23  ;;  %v1645_v10 = vpop.f32.mrb[23].mxu1  ;;  %v1784_v34 = vadd.f32 %v1783_v26, %v1782_v35 }
 0x241   : > { %1742 = vst [vmem:[%s3755_s26 + $0x40] sm:$0xff] %v1645_v10 }
 0x242   : > { %v1801_v21 = vmul.f32 0.0034722222, %v1784_v34 }
 0x243   : > { %v1649_v7 = vpop.f32.mrb[24].mxu1 }
 0x244   : > { %1746 = vst [vmem:[%s3755_s26 + $0x60] sm:$0x3] %v1649_v7  ;;  %v1651_v3 = vpop.f32.mrb[25].mxu1 }
 0x245   : > { %1747 = vst [vmem:[%s3755_s26 + $0x68] sm:$0x3] %v1651_v3 }
 0x2be   : > { %v1770_v1 = vpop.xlane.xlu0 %1769 }
 0x2c2   : > { %v1773_v12 = vpop.xlane.xlu1 %1772 }
 0x2c3   : > { %v1793_v61 = vadd.f32 %v1773_v12, %v1770_v1 }
 0x2c6   : > { %v1767_v5 = vpop.xlane.xlu1 %1766  ;;  %v1776_v63 = vpop.xlane.xlu0 %1775 }
 0x2c7   : > { %v1786_v33 = vadd.f32 %v1785_v53, %v1767_v5  ;;  %v1794_v16 = vadd.f32 %v1793_v61, %v1776_v63 }
 0x2c9   : > { %v1787_v38 = vrot.slane %v1786_v33, 4  ;;  %v1795_v27 = vrot.slane %v1794_v16, 4 }
 0x2cb   : > { %v1788_v15 = vadd.f32 %v1787_v38, %v1786_v33  ;;  %v1796_v56 = vadd.f32 %v1795_v27, %v1794_v16 }
 0x2cd   : > { %v1789_v52 = vrot.slane %v1788_v15, 2  ;;  %v1797_v6 = vrot.slane %v1796_v56, 2 }
 0x2cf   : > { %v1790_v17 = vadd.f32 %v1789_v52, %v1788_v15  ;;  %v1798_v44 = vadd.f32 %v1797_v6, %v1796_v56 }
 0x2d1   : > { %v1791_v19 = vrot.slane %v1790_v17, 1  ;;  %v1799_v45 = vrot.slane %v1798_v44, 1 }
 0x2d3   : > { %v1792_v4 = vadd.f32 %v1791_v19, %v1790_v17  ;;  %v1800_v20 = vadd.f32 %v1799_v45, %v1798_v44 }
 0x2d5   : > { %v1802_v22 = vmul.f32 0.0034722222, %v1792_v4  ;;  %v1803_v24 = vmul.f32 0.0034722222, %v1800_v20 }
 0x2d7   : > { %v1808_v9 = vsel %vm1807_vm6, %v1802_v22, %v1801_v21 }
 0x2d8   : > { %v1810_v25 = vsel %vm1809_vm7, %v1803_v24, %v1808_v9 }
 0x2d9   : > { %1813 = vst.msk [vmem:[%s330_s15] sm:$0x7] %vm1812_vm8, %v1810_v25 }
 0x2da PF: > { %s19_s27 = sadd.s32 1, %s2574_s27  }
 0x2db   : > { %p16_p4 = scmp.ge.s32.totalorder %s19_s27, 4  }
 0x2dd   :  { %18 = sbr.rel (!%p16_p4) target bundleno = 1 (0x1), region = 106 }

</bundles_post_ra>
